<compile_context>
chip_gen: v7x
topology: tpu7x:2x2x1
jax: 0.10.0
libtpu: 0.0.40
codegen_flags: <defaults>
</compile_context>

<pallas_src>
import math

import jax
import jax.numpy as jnp
from jax.experimental import pallas as pl
from jax.experimental.pallas import tpu as pltpu

_N_PAD = 128      # lane-padded width of the final N=1 projection
_MAX_TK = 2048    # K-tile cap for fc1 (keeps resident w1 tile <= 4 MiB bf16)


def _round_up(n, m):
    return ((n + m - 1) // m) * m


def _default_act_dtype():
    """bf16 elementwise math on v6e/v7x (bf16 VPU/EUP); f32 on v5e (no bf16 VPU)."""
    try:
        kind = jax.devices()[0].device_kind.lower()
    except Exception:
        return jnp.bfloat16
    if "v5 lite" in kind or "v5e" in kind or "v5litepod" in kind:
        return jnp.float32
    return jnp.bfloat16


def _make_kernel(act_dtype):
    def kernel(x_ref, w1_ref, b1_ref, w2_ref, b2_ref, w3_ref, b3_ref,
               o_ref, acc_ref):
        k = pl.program_id(1)

        # fc1 partial: accumulate x @ w1 over the K (in_features) grid axis.
        @pl.when(k == 0)
        def _():
            acc_ref[...] = jnp.zeros_like(acc_ref)

        acc_ref[...] += jnp.dot(x_ref[...], w1_ref[...],
                                preferred_element_type=jnp.float32)

        # Epilogue on the last K step: bias+GELU, fc2+GELU, fc3+sigmoid, store.
        @pl.when(k == pl.num_programs(1) - 1)
        def _():
            # fc1 bias + GELU (Dropout -> identity in eval mode)
            h1 = acc_ref[...] + b1_ref[...]                        # f32
            h1 = jax.nn.gelu(h1.astype(act_dtype), approximate=True)
            h1 = h1.astype(jnp.bfloat16)                           # MXU operand

            # fc2: Linear(1024, 512) + GELU (Dropout -> identity in eval mode)
            h2 = jnp.dot(h1, w2_ref[...], preferred_element_type=jnp.float32)
            h2 = h2 + b2_ref[...]
            h2 = jax.nn.gelu(h2.astype(act_dtype), approximate=True)
            h2 = h2.astype(jnp.bfloat16)

            # fc3: Linear(512, 1) + Sigmoid, lane-padded to 128 output columns
            # (only column 0 is meaningful; wrapper slices it out).
            h3 = jnp.dot(h2, w3_ref[...], preferred_element_type=jnp.float32)
            o_ref[...] = jax.nn.sigmoid(h3 + b3_ref[...]).astype(o_ref.dtype)

    return kernel


def prepare_params(params):
    """One-time pad/cast of the weights (hoisted out of the per-call hot path).

    params: (w1, b1, w2, b2, w3, b3) with W as (in, out)."""
    w1, b1, w2, b2, w3, b3 = params
    F, H1 = w1.shape
    H2 = w2.shape[1]

    F_pad = _round_up(max(F, 128), 128)
    if F_pad > _MAX_TK:                      # large in_features -> K-tiled fc1
        F_pad = _round_up(F_pad, _MAX_TK)

    w1_p = jnp.zeros((F_pad, H1), jnp.bfloat16).at[:F, :].set(
        w1.astype(jnp.bfloat16))
    w2_b = w2.astype(jnp.bfloat16)
    w3_p = jnp.zeros((H2, _N_PAD), jnp.bfloat16).at[:, :1].set(
        w3.reshape(H2, 1).astype(jnp.bfloat16))
    b1_f = b1.reshape(1, H1).astype(jnp.float32)
    b2_f = b2.reshape(1, H2).astype(jnp.float32)
    b3_p = jnp.zeros((1, _N_PAD), jnp.float32).at[:, :1].set(
        jnp.reshape(b3, (1, 1)).astype(jnp.float32))

    return {"w1": w1_p, "b1": b1_f, "w2": w2_b, "b2": b2_f,
            "w3": w3_p, "b3": b3_p, "in_features": F}


def classifier_head(x, prepared, *, block_b=512, act_dtype=None):
    """x: (B, in_features) f32.  prepared: output of prepare_params()."""
    if act_dtype is None:
        act_dtype = _default_act_dtype()

    w1_p, b1_f = prepared["w1"], prepared["b1"]
    w2_b, b2_f = prepared["w2"], prepared["b2"]
    w3_p, b3_p = prepared["w3"], prepared["b3"]
    F = prepared["in_features"]

    B, Fx = x.shape
    assert Fx == F, f"x feature dim {Fx} != prepared in_features {F}"
    F_pad, H1 = w1_p.shape
    H2 = w2_b.shape[1]

    # fc1 K tiling (only kicks in for large in_features; otherwise nk == 1).
    TK = min(F_pad, _MAX_TK)
    nk = F_pad // TK

    # Batch tile: multiple of 8 sublanes, at most block_b; force >= 2 tiles so
    # the "parallel" axis shards across both TensorCores on v7x.
    B8 = _round_up(B, 8)
    TB = min(_round_up(block_b, 8), max(8, _round_up(pl.cdiv(B8, 2), 8)))
    B_pad = max(_round_up(B, TB), 2 * TB)
    nb = B_pad // TB

    # Pad/cast x only if actually required (avoid an extra full-activation pass).
    xb = x.astype(jnp.bfloat16)
    if B_pad != B or F_pad != Fx:
        xb = jnp.pad(xb, ((0, B_pad - B), (0, F_pad - Fx)))

    # Explicit VMEM budget: double-buffered tiles + resident weights + scratch.
    vmem_bytes = (2 * TB * TK * 2            # x tiles (bf16)
                  + 2 * TK * H1 * 2          # w1 tiles (bf16)
                  + 2 * H1 * H2 * 2          # w2 (bf16, resident)
                  + 2 * H2 * _N_PAD * 2      # w3 (bf16, resident)
                  + 2 * TB * _N_PAD * 2      # out tiles (bf16)
                  + TB * H1 * 4              # fc1 f32 accumulator scratch
                  + 2 * (H1 + H2 + _N_PAD) * 4)
    vmem_limit = int(min(max(2 * vmem_bytes + (8 << 20), 32 << 20), 56 << 20))

    flops = 2 * B_pad * (F_pad * H1 + H1 * H2 + H2 * _N_PAD)
    transcendentals = B_pad * (H1 + H2 + _N_PAD)
    bytes_accessed = (xb.size * 2 + w1_p.size * 2 + w2_b.size * 2 + w3_p.size * 2
                      + (H1 + H2 + _N_PAD) * 4 + B_pad * _N_PAD * 2)

    out = pl.pallas_call(
        _make_kernel(act_dtype),
        out_shape=jax.ShapeDtypeStruct((B_pad, _N_PAD), jnp.bfloat16),
        grid_spec=pltpu.PrefetchScalarGridSpec(
            num_scalar_prefetch=0,
            grid=(nb, nk),
            in_specs=[
                pl.BlockSpec((TB, TK), lambda i, k: (i, k)),      # x: batch+K tiled
                pl.BlockSpec((TK, H1), lambda i, k: (k, 0)),      # w1: K tiled
                pl.BlockSpec((1, H1), lambda i, k: (0, 0)),       # b1 (resident)
                pl.BlockSpec((H1, H2), lambda i, k: (0, 0)),      # w2 (resident)
                pl.BlockSpec((1, H2), lambda i, k: (0, 0)),       # b2
                pl.BlockSpec((H2, _N_PAD), lambda i, k: (0, 0)),  # w3 (lane-padded)
                pl.BlockSpec((1, _N_PAD), lambda i, k: (0, 0)),   # b3 (lane-padded)
            ],
            out_specs=pl.BlockSpec((TB, _N_PAD), lambda i, k: (i, 0)),
            scratch_shapes=[pltpu.VMEM((TB, H1), jnp.float32)],   # fc1 accumulator
        ),
        compiler_params=pltpu.CompilerParams(
            dimension_semantics=("parallel", "arbitrary"),
            vmem_limit_bytes=vmem_limit),
        cost_estimate=pl.CostEstimate(
            flops=flops,
            transcendentals=transcendentals,
            bytes_accessed=bytes_accessed),
    )(xb, w1_p, b1_f, w2_b, b2_f, w3_p, b3_p)

    return out[:B, :1].astype(jnp.float32)


def init_params(key, in_features):
    """Deterministic init mimicking PyTorch Linear default U(-1/sqrt(fan_in), +...).

    Weights are returned already transposed to (in, out) for the kernel."""
    dims = [(in_features, 1024), (1024, 512), (512, 1)]
    params = []
    for (fan_in, fan_out) in dims:
        key, kw, kb = jax.random.split(key, 3)
        bound = 1.0 / math.sqrt(fan_in)
        w = jax.random.uniform(kw, (fan_in, fan_out), jnp.float32, -bound, bound)
        b = jax.random.uniform(kb, (1, fan_out), jnp.float32, -bound, bound)
        params += [w, b]
    return tuple(params)


def classifier_head_ref(x, params):
    """Pure-JAX f32 reference (exact erf GELU, torch parity) for sanity checking."""
    w1, b1, w2, b2, w3, b3 = params

    def gelu_exact(v):
        return 0.5 * v * (1.0 + jax.lax.erf(v * (1.0 / math.sqrt(2.0))))

    h = gelu_exact(x @ w1 + b1)
    h = gelu_exact(h @ w2 + b2)
    return jax.nn.sigmoid(h @ w3 + b3)


if __name__ == "__main__":
    key = jax.random.PRNGKey(0)
    k_x, k_p = jax.random.split(key)

    B, in_features = 8, 32
    x = jax.random.normal(k_x, (B, in_features), jnp.float32)
    params = init_params(k_p, in_features)

    prepared = prepare_params(params)           # one-time weight pad/cast
    out = classifier_head(x, prepared)
    out = jax.block_until_ready(out)

    ref = classifier_head_ref(x, params)
    assert out.shape == (B, 1)
    # bf16 MXU operands + tanh-approx GELU -> tolerance loosened vs f32/erf reference.
    assert jnp.allclose(out, ref, atol=2.5e-2, rtol=2.5e-2), "mismatch vs JAX reference"

    print("KERNEL_OK")
</pallas_src>

<mosaic_0001>
module attributes {stable_mosaic.version = 11 : i64} {
  func.func @kernel(%arg0: i32, %arg1: i32, %arg2: memref<8x128xbf16, #tpu.memory_space<vmem>>, %arg3: memref<128x1024xbf16, #tpu.memory_space<vmem>>, %arg4: memref<1x1024xf32, #tpu.memory_space<vmem>>, %arg5: memref<1024x512xbf16, #tpu.memory_space<vmem>>, %arg6: memref<1x512xf32, #tpu.memory_space<vmem>>, %arg7: memref<512x128xbf16, #tpu.memory_space<vmem>>, %arg8: memref<1x128xf32, #tpu.memory_space<vmem>>, %arg9: memref<8x128xbf16, #tpu.memory_space<vmem>>, %arg10: memref<8x1024xf32, #tpu.memory_space<vmem>>) attributes {dimension_semantics = [#tpu.dimension_semantics<parallel>, #tpu.dimension_semantics<arbitrary>], iteration_bounds = array<i64: 2, 1>, scalar_prefetch = 0 : i64, scratch_operands = 1 : i64, tpu.core_type = #tpu.core_type<tc>, window_params = [{transform_indices = @transform_0, window_bounds = array<i64: 8, 128>}, {transform_indices = @transform_1, window_bounds = array<i64: 128, 1024>}, {pipeline_mode = #tpu.pipeline_mode<synchronous>, transform_indices = @transform_2, window_bounds = array<i64: 1, 1024>}, {pipeline_mode = #tpu.pipeline_mode<synchronous>, transform_indices = @transform_3, window_bounds = array<i64: 1024, 512>}, {pipeline_mode = #tpu.pipeline_mode<synchronous>, transform_indices = @transform_4, window_bounds = array<i64: 1, 512>}, {pipeline_mode = #tpu.pipeline_mode<synchronous>, transform_indices = @transform_5, window_bounds = array<i64: 512, 128>}, {pipeline_mode = #tpu.pipeline_mode<synchronous>, transform_indices = @transform_6, window_bounds = array<i64: 1, 128>}, {transform_indices = @transform_7, window_bounds = array<i64: 8, 128>}]} {
    %c0_i32 = arith.constant 0 : i32
    %0 = arith.cmpi eq, %arg1, %c0_i32 : i32
    %1 = arith.extui %0 : i1 to i32
    %c0_i32_0 = arith.constant 0 : i32
    %2 = arith.cmpi ne, %1, %c0_i32_0 : i32
    scf.if %2 {
      %cst_10 = arith.constant 0.000000e+00 : f32
      %12 = vector.broadcast %cst_10 : f32 to vector<8x1024xf32>
      %c0_11 = arith.constant 0 : index
      %c0_12 = arith.constant 0 : index
      %13 = vector.load %arg10[%c0_11, %c0_12] : memref<8x1024xf32, #tpu.memory_space<vmem>>, vector<8x1024xf32>
      tpu.vector_store %arg10[%c0_11, %c0_12], %12 {strides = array<i32>} : memref<8x1024xf32, #tpu.memory_space<vmem>>, vector<8x1024xf32>,
    } else {
    }
    %c0 = arith.constant 0 : index
    %c0_1 = arith.constant 0 : index
    %3 = vector.load %arg10[%c0, %c0_1] : memref<8x1024xf32, #tpu.memory_space<vmem>>, vector<8x1024xf32>
    %c0_2 = arith.constant 0 : index
    %c0_3 = arith.constant 0 : index
    %4 = vector.load %arg2[%c0_2, %c0_3] : memref<8x128xbf16, #tpu.memory_space<vmem>>, vector<8x128xbf16>
    %c0_4 = arith.constant 0 : index
    %c0_5 = arith.constant 0 : index
    %5 = vector.load %arg3[%c0_4, %c0_5] : memref<128x1024xbf16, #tpu.memory_space<vmem>>, vector<128x1024xbf16>
    %cst = arith.constant dense<0.000000e+00> : vector<8x1024xf32>
    %6 = tpu.matmul %4, %5, %cst {dimension_numbers = #tpu.dot_dimension_numbers<[1], [0], [0], [1], [0, 0, 1, 1], [], []>} : vector<8x128xbf16>, vector<128x1024xbf16>, vector<8x1024xf32> -> vector<8x1024xf32>
    %7 = arith.addf %3, %6 : vector<8x1024xf32>
    %c0_6 = arith.constant 0 : index
    %c0_7 = arith.constant 0 : index
    %8 = vector.load %arg10[%c0_6, %c0_7] : memref<8x1024xf32, #tpu.memory_space<vmem>>, vector<8x1024xf32>
    tpu.vector_store %arg10[%c0_6, %c0_7], %7 {strides = array<i32>} : memref<8x1024xf32, #tpu.memory_space<vmem>>, vector<8x1024xf32>,
    %c0_i32_8 = arith.constant 0 : i32
    %9 = arith.cmpi eq, %arg1, %c0_i32_8 : i32
    %10 = arith.extui %9 : i1 to i32
    %c0_i32_9 = arith.constant 0 : i32
    %11 = arith.cmpi ne, %10, %c0_i32_9 : i32
    scf.if %11 {
      %c0_10 = arith.constant 0 : index
      %c0_11 = arith.constant 0 : index
      %12 = vector.load %arg10[%c0_10, %c0_11] : memref<8x1024xf32, #tpu.memory_space<vmem>>, vector<8x1024xf32>
      %c0_12 = arith.constant 0 : index
      %c0_13 = arith.constant 0 : index
      %13 = vector.load %arg4[%c0_12, %c0_13] : memref<1x1024xf32, #tpu.memory_space<vmem>>, vector<1x1024xf32>
      %14 = vector.broadcast %13 : vector<1x1024xf32> to vector<8x1024xf32>
      %15 = arith.addf %12, %14 : vector<8x1024xf32>
      %16 = arith.truncf %15 : vector<8x1024xf32> to vector<8x1024xbf16>
      %17 = arith.mulf %16, %16 : vector<8x1024xbf16>
      %18 = arith.mulf %16, %17 : vector<8x1024xbf16>
      %cst_14 = arith.constant 4.467770e-02 : bf16
      %19 = vector.broadcast %cst_14 : bf16 to vector<8x1024xbf16>
      %20 = arith.mulf %19, %18 : vector<8x1024xbf16>
      %21 = arith.addf %16, %20 : vector<8x1024xbf16>
      %cst_15 = arith.constant 7.968750e-01 : bf16
      %22 = vector.broadcast %cst_15 : bf16 to vector<8x1024xbf16>
      %23 = arith.mulf %22, %21 : vector<8x1024xbf16>
      %24 = math.tanh %23 : vector<8x1024xbf16>
      %cst_16 = arith.constant 1.000000e+00 : bf16
      %25 = vector.broadcast %cst_16 : bf16 to vector<8x1024xbf16>
      %26 = arith.addf %25, %24 : vector<8x1024xbf16>
      %cst_17 = arith.constant 5.000000e-01 : bf16
      %27 = vector.broadcast %cst_17 : bf16 to vector<8x1024xbf16>
      %28 = arith.mulf %27, %26 : vector<8x1024xbf16>
      %29 = arith.mulf %16, %28 : vector<8x1024xbf16>
      %c0_18 = arith.constant 0 : index
      %c0_19 = arith.constant 0 : index
      %30 = vector.load %arg5[%c0_18, %c0_19] : memref<1024x512xbf16, #tpu.memory_space<vmem>>, vector<1024x512xbf16>
      %cst_20 = arith.constant dense<0.000000e+00> : vector<8x512xf32>
      %31 = tpu.matmul %29, %30, %cst_20 {dimension_numbers = #tpu.dot_dimension_numbers<[1], [0], [0], [1], [0, 0, 1, 1], [], []>} : vector<8x1024xbf16>, vector<1024x512xbf16>, vector<8x512xf32> -> vector<8x512xf32>
      %c0_21 = arith.constant 0 : index
      %c0_22 = arith.constant 0 : index
      %32 = vector.load %arg6[%c0_21, %c0_22] : memref<1x512xf32, #tpu.memory_space<vmem>>, vector<1x512xf32>
      %33 = vector.broadcast %32 : vector<1x512xf32> to vector<8x512xf32>
      %34 = arith.addf %31, %33 : vector<8x512xf32>
      %35 = arith.truncf %34 : vector<8x512xf32> to vector<8x512xbf16>
      %36 = arith.mulf %35, %35 : vector<8x512xbf16>
      %37 = arith.mulf %35, %36 : vector<8x512xbf16>
      %cst_23 = arith.constant 4.467770e-02 : bf16
      %38 = vector.broadcast %cst_23 : bf16 to vector<8x512xbf16>
      %39 = arith.mulf %38, %37 : vector<8x512xbf16>
      %40 = arith.addf %35, %39 : vector<8x512xbf16>
      %cst_24 = arith.constant 7.968750e-01 : bf16
      %41 = vector.broadcast %cst_24 : bf16 to vector<8x512xbf16>
      %42 = arith.mulf %41, %40 : vector<8x512xbf16>
      %43 = math.tanh %42 : vector<8x512xbf16>
      %cst_25 = arith.constant 1.000000e+00 : bf16
      %44 = vector.broadcast %cst_25 : bf16 to vector<8x512xbf16>
      %45 = arith.addf %44, %43 : vector<8x512xbf16>
      %cst_26 = arith.constant 5.000000e-01 : bf16
      %46 = vector.broadcast %cst_26 : bf16 to vector<8x512xbf16>
      %47 = arith.mulf %46, %45 : vector<8x512xbf16>
      %48 = arith.mulf %35, %47 : vector<8x512xbf16>
      %c0_27 = arith.constant 0 : index
      %c0_28 = arith.constant 0 : index
      %49 = vector.load %arg7[%c0_27, %c0_28] : memref<512x128xbf16, #tpu.memory_space<vmem>>, vector<512x128xbf16>
      %cst_29 = arith.constant dense<0.000000e+00> : vector<8x128xf32>
      %50 = tpu.matmul %48, %49, %cst_29 {dimension_numbers = #tpu.dot_dimension_numbers<[1], [0], [0], [1], [0, 0, 1, 1], [], []>} : vector<8x512xbf16>, vector<512x128xbf16>, vector<8x128xf32> -> vector<8x128xf32>
      %c0_30 = arith.constant 0 : index
      %c0_31 = arith.constant 0 : index
      %51 = vector.load %arg8[%c0_30, %c0_31] : memref<1x128xf32, #tpu.memory_space<vmem>>, vector<1x128xf32>
      %52 = vector.broadcast %51 : vector<1x128xf32> to vector<8x128xf32>
      %53 = arith.addf %50, %52 : vector<8x128xf32>
      %54 = arith.negf %53 : vector<8x128xf32>
      %55 = math.exp %54 : vector<8x128xf32>
      %cst_32 = arith.constant 1.000000e+00 : f32
      %56 = vector.broadcast %cst_32 : f32 to vector<8x128xf32>
      %57 = arith.addf %56, %55 : vector<8x128xf32>
      %58 = arith.divf %56, %57 : vector<8x128xf32>
      %59 = arith.truncf %58 : vector<8x128xf32> to vector<8x128xbf16>
      %c0_33 = arith.constant 0 : index
      %c0_34 = arith.constant 0 : index
      %60 = vector.load %arg9[%c0_33, %c0_34] : memref<8x128xbf16, #tpu.memory_space<vmem>>, vector<8x128xbf16>
      tpu.vector_store %arg9[%c0_33, %c0_34], %59 {strides = array<i32>} : memref<8x128xbf16, #tpu.memory_space<vmem>>, vector<8x128xbf16>,
    } else {
    }
    return
  }
  func.func @transform_0(%arg0: i32, %arg1: i32) -> (i32, i32) {
    %c0_i32 = arith.constant 0 : i32
    return %arg0, %arg1 : i32, i32
  }
  func.func @transform_1(%arg0: i32, %arg1: i32) -> (i32, i32) {
    %c0_i32 = arith.constant 0 : i32
    %c0_i32_0 = arith.constant 0 : i32
    return %arg1, %c0_i32 : i32, i32
  }
  func.func @transform_2(%arg0: i32, %arg1: i32) -> (i32, i32) {
    %c0_i32 = arith.constant 0 : i32
    %c0_i32_0 = arith.constant 0 : i32
    %c0_i32_1 = arith.constant 0 : i32
    return %c0_i32, %c0_i32_0 : i32, i32
  }
  func.func @transform_3(%arg0: i32, %arg1: i32) -> (i32, i32) {
    %c0_i32 = arith.constant 0 : i32
    %c0_i32_0 = arith.constant 0 : i32
    %c0_i32_1 = arith.constant 0 : i32
    return %c0_i32, %c0_i32_0 : i32, i32
  }
  func.func @transform_4(%arg0: i32, %arg1: i32) -> (i32, i32) {
    %c0_i32 = arith.constant 0 : i32
    %c0_i32_0 = arith.constant 0 : i32
    %c0_i32_1 = arith.constant 0 : i32
    return %c0_i32, %c0_i32_0 : i32, i32
  }
  func.func @transform_5(%arg0: i32, %arg1: i32) -> (i32, i32) {
    %c0_i32 = arith.constant 0 : i32
    %c0_i32_0 = arith.constant 0 : i32
    %c0_i32_1 = arith.constant 0 : i32
    return %c0_i32, %c0_i32_0 : i32, i32
  }
  func.func @transform_6(%arg0: i32, %arg1: i32) -> (i32, i32) {
    %c0_i32 = arith.constant 0 : i32
    %c0_i32_0 = arith.constant 0 : i32
    %c0_i32_1 = arith.constant 0 : i32
    return %c0_i32, %c0_i32_0 : i32, i32
  }
  func.func @transform_7(%arg0: i32, %arg1: i32) -> (i32, i32) {
    %c0_i32 = arith.constant 0 : i32
    %c0_i32_0 = arith.constant 0 : i32
    return %arg0, %c0_i32 : i32, i32
  }
}

</mosaic_0001>

<bundles_post_ra>
// kernel: tpu_custom_call.1
= control target key start
LH: loop header
LB: loop body
LE: loop exit
PB: predicated region body
PF: predicated region fallthrough
CT: control target
= control target key end

     0   :  { %s5209_s0 = inlined_call_operand.hbm [shape: bf16[16,128], index: 0, kind: input, shape index: {}]   ;;  %s5210_s1 = inlined_call_operand.hbm [shape: bf16[128,1024], index: 1, kind: input, shape index: {}]   ;;  %s5211_s2 = inlined_call_operand.hbm [shape: f32[1,1024], index: 2, kind: input, shape index: {}]   ;;  %s5212_s3 = inlined_call_operand.hbm [shape: bf16[1024,512], index: 3, kind: input, shape index: {}]   ;;  %s5213_s4 = inlined_call_operand.vmem [shape: f32[1,512], index: 4, kind: input, shape index: {}]   ;;  %s5214_s5 = inlined_call_operand.hbm [shape: bf16[512,128], index: 5, kind: input, shape index: {}]   ;;  %s5215_s6 = inlined_call_operand.vmem [shape: f32[1,128], index: 6, kind: input, shape index: {}]   ;;  %s5216_s7 = inlined_call_operand.hbm [shape: bf16[16,128], index: 7, kind: output, shape index: {}]  }
   0x1   :  { %5222 = sst [smem:[#allocation17_spill]] %s5210_s1 }
   0x2   :  { %5223 = sst [smem:[#allocation18_spill]] %s5211_s2 }
   0x3   :  { %12 = vsyncpa [#allocation4], 0 }
   0x4   :  { %14 = vsyncpa [#allocation4 + $0x1], 0 }
   0x5   :  { %15 = vsyncpa [#allocation7], 0 }
   0x6   :  { %16 = vsyncpa [#allocation10], 0 }
   0x7   :  { %17 = vsyncpa [#allocation5], 0 }
   0x8   :  { %19 = vsyncpa [#allocation5 + $0x1], 0  ;;  %s4804_s24 = smov 0   ;;  %s4806_s25 = smov 0  }
   0x9   :  { %s4808_s26 = smov 0   ;;  %s4810_s27 = smov 0  }
   0xa   :  { %s4812_s28 = smov 0   ;;  %s4814_s29 = smov 0  }
   0xb LB: > { %s5217_s30 = sadd.s32 4294967295, %s4749_s29   ;;  %p3518_p0 = scmp.ge.s32.totalorder %s4749_s29, 1  ;;  %s4749_s29 = sphi %s4814_s29, %s25_s29   ;;  %s4745_s28 = sphi %s4812_s28, %s5246_s28   ;;  %s4741_s27 = sphi %s4810_s27, %s5245_s27   ;;  %s4737_s26 = sphi %s4808_s26, %s5244_s26   ;;  %s4733_s25 = sphi %s4806_s25, %s5243_s25   ;;  %s4729_s24 = sphi %s4804_s24, %s5242_s24  }
   0xc   : > { %p4838_p1 = scmp.eq.s32.totalorder %s5217_s30, 0  ;;  %p227_p2 = scmp.lt.s32.totalorder %s4749_s29, 3 }
   0xd   : > { %s4751_s10 = smov [#allocation6]   ;;  %s4752_s13 = smov [#allocation9]  }
   0xe   : > { %s5224_s8 = scalar_select %p4838_p1, 1, 0 }
   0xf   : > { %p4843_p3 = pnand %p3518_p0, %p227_p2  ;;  %s243_s11 = sshll.u32 %s4751_s10, 4  ;;  %s4847_s11 = int_to_ptr.vmem [resolvable:$true] %s243_s11 }
  0x10   : > { %s267_s14 = sshll.u32 %s4752_s13, 4  ;;  %s5227_s1 = sld [smem:[#allocation17_spill]]  ;;  %s4858_s14 = int_to_ptr.vmem [resolvable:$true] %s267_s14 }
  0x11   : > { %s5225_s9 = scalar_select %p4843_p3, 1, 0 }
  0x12   : > { %p3983_p4 = pneg %p4843_p3 }
  0x14   : > { %p4854_p6 = pnand %p3983_p4, %p4838_p1 }
  0x16   : > { %s4517_s17 = scalar_lea.hbm %s5227_s1, 8192  ;;  %p4868_p8 = pneg %p4854_p6 }
  0x17   : > { %p4518_p7 = scmp.ne.s32.totalorder %s5227_s1, %s4517_s17  ;;  %p4524_p11 = scmp.lt.u32.totalorder %s4517_s17, %s5227_s1 }
  0x19   : > { %p4520_p9 = pnand %p4868_p8, %p4518_p7 }
  0x1b   : > { %p4521_p10 = pneg %p4520_p9 }
  0x1d   : > { %p4526_p12 = pnand %p4524_p11, %p4521_p10 }
  0x1f   : > { %4529 = shalt.err (!%p4526_p12)
}
  0x20   : > { %s4530_s23 = scalar_lea.vmem %s4847_s11, 8192  ;;  %p4538_p4 = scmp.lt.s32.totalorder %s4847_s11, %s4847_s11 }
  0x21   : > { %p4531_p13 = scmp.ne.s32.totalorder %s4847_s11, %s4530_s23  ;;  %p4539_p5 = scmp.lt.s32.totalorder %s4530_s23, %s4530_s23 }
  0x23   : > { %p4533_p0 = pnand %p4531_p13, %p4868_p8  ;;  %p4540_p7 = por %p4539_p5, %p4538_p4 }
  0x25   : > { %p4534_p2 = pneg %p4533_p0 }
  0x27   : > { %p4541_p9 = pnand %p4540_p7, %p4534_p2 }
  0x29   : > { %4544 = shalt.err (!%p4541_p9)
}
  0x2a   : > { %s4753_s10 = smov 512   ;;  %s4754_s13 = smov 32  }
  0x2b   : > { %3986 = dma.hbm_to_vmem [thread:$0]  (!%p4854_p6), %s5227_s1, 8192, %s4847_s11, [#allocation7], %s4753_s10, %s4753_s10, %s4754_s13  }
  0x2c   : > { %s4545_s19 = scalar_lea.hbm %s5212_s3, 32768 }
  0x2d   : > { %p4546_p5 = scmp.ne.s32.totalorder %s5212_s3, %s4545_s19  ;;  %p4552_p12 = scmp.lt.u32.totalorder %s4545_s19, %s5212_s3 }
  0x2f   : > { %p4548_p10 = pnand %p4546_p5, %p4868_p8 }
  0x31   : > { %p4549_p11 = pneg %p4548_p10 }
  0x33   : > { %p4554_p13 = pnand %p4552_p12, %p4549_p11 }
  0x35   : > { %4557 = shalt.err (!%p4554_p13)
}
  0x36   : > { %s4558_s11 = scalar_lea.vmem %s4858_s14, 32768  ;;  %p4566_p7 = scmp.lt.s32.totalorder %s4858_s14, %s4858_s14 }
  0x37   : > { %p4559_p0 = scmp.ne.s32.totalorder %s4858_s14, %s4558_s11  ;;  %p4567_p9 = scmp.lt.s32.totalorder %s4558_s11, %s4558_s11 }
  0x39   : > { %p4561_p2 = pnand %p4559_p0, %p4868_p8  ;;  %p4568_p5 = por %p4567_p9, %p4566_p7 }
  0x3b   : > { %p4562_p4 = pneg %p4561_p2 }
  0x3d   : > { %p4569_p10 = pnand %p4568_p5, %p4562_p4 }
  0x3f   : > { %4572 = shalt.err (!%p4569_p10)
}
  0x40   : > { %s4755_s10 = smov 256   ;;  %s4756_s30 = smov 16  }
  0x41   : > { %3992 = dma.hbm_to_vmem [thread:$0]  (!%p4854_p6), %s5212_s3, 32768, %s4858_s14, [#allocation10], %s4755_s10, %s4755_s10, %s4756_s30  }
  0x42   : > { %s4757_s16 = smov [#allocation8]   ;;  %s4758_s18 = smov [#allocation11]  }
  0x43   : > { %s257_s17 = sshll.u32 %s4757_s16, 4  ;;  %s283_s19 = sshll.u32 %s4758_s18, 4  ;;  %s258_s17 = int_to_ptr.vmem [resolvable:$true] %s257_s17  ;;  %s4912_s19 = int_to_ptr.vmem [resolvable:$true] %s283_s19 }
  0x44   : > { %s5229_s2 = sld [smem:[#allocation18_spill]] }
  0x4a   : > { %s4573_s23 = scalar_lea.hbm %s5229_s2, 128 }
  0x4b   : > { %p4574_p11 = scmp.ne.s32.totalorder %s5229_s2, %s4573_s23  ;;  %p4580_p0 = scmp.lt.u32.totalorder %s4573_s23, %s5229_s2 }
  0x4d   : > { %p4576_p12 = pnand %p4574_p11, %p4868_p8 }
  0x4f   : > { %p4577_p13 = pneg %p4576_p12 }
  0x51   : > { %p4582_p2 = pnand %p4580_p0, %p4577_p13 }
  0x53   : > { %4585 = shalt.err (!%p4582_p2)
}
  0x54   : > { %s4586_s10 = scalar_lea.vmem %s258_s17, 128  ;;  %p4594_p5 = scmp.lt.s32.totalorder %s258_s17, %s258_s17 }
  0x55   : > { %p4587_p4 = scmp.ne.s32.totalorder %s258_s17, %s4586_s10  ;;  %p4595_p10 = scmp.lt.s32.totalorder %s4586_s10, %s4586_s10 }
  0x57   : > { %p4589_p7 = pnand %p4587_p4, %p4868_p8  ;;  %p4596_p3 = por %p4595_p10, %p4594_p5 }
  0x59   : > { %p4590_p9 = pneg %p4589_p7 }
  0x5b   : > { %p4597_p1 = pnand %p4596_p3, %p4590_p9 }
  0x5d   : > { %4600 = shalt.err (!%p4597_p1)
}
  0x5e   : > { %3989 = dma.hbm_to_vmem [thread:$0]  (!%p4854_p6), %s5229_s2, 128, %s258_s17, [#allocation7]  }
  0x5f   : > { %s4601_s18 = scalar_lea.hbm %s5214_s5, 4096 }
  0x60   : > { %p4602_p11 = scmp.ne.s32.totalorder %s5214_s5, %s4601_s18  ;;  %p4608_p1 = scmp.lt.u32.totalorder %s4601_s18, %s5214_s5 }
  0x62   : > { %p4604_p12 = pnand %p4602_p11, %p4868_p8 }
  0x64   : > { %p4605_p13 = pneg %p4604_p12 }
  0x66   : > { %p4610_p3 = pnand %p4608_p1, %p4605_p13 }
  0x68   : > { %4613 = shalt.err (!%p4610_p3)
}
  0x69   : > { %s4614_s17 = scalar_lea.vmem %s4912_s19, 4096  ;;  %p4622_p7 = scmp.lt.s32.totalorder %s4912_s19, %s4912_s19 }
  0x6a   : > { %p4615_p0 = scmp.ne.s32.totalorder %s4912_s19, %s4614_s17  ;;  %p4623_p9 = scmp.lt.s32.totalorder %s4614_s17, %s4614_s17 }
  0x6c   : > { %p4617_p2 = pnand %p4615_p0, %p4868_p8  ;;  %p4624_p5 = por %p4623_p9, %p4622_p7 }
  0x6e   : > { %p4618_p4 = pneg %p4617_p2 }
  0x70   : > { %p4625_p10 = pnand %p4624_p5, %p4618_p4 }
  0x72   : > { %4628 = shalt.err (!%p4625_p10)
}
  0x73   : > { %s4759_s13 = smov 64   ;;  %s4760_s20 = smov 4  }
  0x74   : > { %3995 = dma.hbm_to_vmem [thread:$0]  (!%p4854_p6), %s5214_s5, 4096, %s4912_s19, [#allocation10], %s4759_s13, %s4759_s13, %s4760_s20  }
  0x75   : > { %s3517_s1 = sadd.s32 4294967294, %s4749_s29   ;;  %s37_s30 = sadd.s32 1, %s4745_s28 }
  0x76   : > { %p39_p8 = scmp.ge.s32.totalorder %s37_s30, 2  ;;  %s46_s15 = sadd.s32 1, %s4737_s26 }
  0x77   : > { %p53_p11 = scmp.ne.s32.totalorder %s4737_s26, %s4733_s25  ;;  %p54_p12 = scmp.eq.s32.totalorder %s4749_s29, 0 }
  0x78   : > { %s5248_s30 = smov (%p39_p8, %s37_s30), 0  ;;  %p59_p1 = scmp.ne.s32.totalorder %s4733_s25, %s4729_s24 }
  0x79   : > { %p4963_p13 = por %p54_p12, %p53_p11  ;;  %s41_s12 = ssub.s32 %s4745_s28, %s5248_s30 }
  0x7a   : > { %s5231_s19 = sadd.s32 4294967295, %s4749_s29   ;;  %p44_p3 = scmp.eq.s32.totalorder %s41_s12, 0 }
  0x7b   : > { %p214_p6 = scmp.eq.s32.totalorder %s5231_s19, 1  ;;  %p5232_p0 = scmp.ne.s32.totalorder %s5224_s8, 0 }
  0x7c   : > { %p220_p7 = scmp.eq.s32.totalorder %s3517_s1, 1  ;;  %p4008_p5 = scmp.lt.s32.totalorder %s4749_s29, 2 }
  0x7d   : > { %p4975_p2 = por %p5232_p0, %p59_p1  ;;  %p4979_p4 = por %p214_p6, %p53_p11 }
  0x7e   : > { %s4984_s22 = scalar_select %p44_p3, %s4737_s26, %s46_s15  }
  0x7f   : > { %s5234_s21 = scalar_select %p4979_p4, 1, 0 }
  0x80   : > { %p4986_p9 = por %p220_p7, %p59_p1  ;;  %s300_s11 = sand.u32 1, %s4737_s26  }
  0x81   : > { %s3525_s17 = sshll.u32 %s4745_s28, 6  ;;  %s3524_s13 = sshll.u32 %s300_s11, 2 }
  0x82   : > { %s5235_s23 = scalar_select %p4986_p9, 1, 0 }
  0x83   : > { %s4996_s10 = scalar_lea.hbm %s5209_s0, %s3525_s17  ;;  %s304_s1 = scalar_lea.vmem [#allocation3], %s3524_s13 }
  0x84   : > { %s312_s15 = sshll.u32 %s304_s1, 4  ;;  %p5000_p10 = pnand %p4008_p5, %p4963_p13  ;;  %s5004_s15 = int_to_ptr.vmem [resolvable:$true] %s312_s15 }
  0x85   : > { %s301_s19 = scalar_lea.sflag [#allocation4], %s300_s11  ;;  %s4629_s2 = scalar_lea.hbm %s4996_s10, 64 }
  0x86   : > { %p4630_p8 = scmp.ne.s32.totalorder %s4996_s10, %s4629_s2  ;;  %p4631_p11 = pneg %p5000_p10 }
  0x87   : > { %s4634_s16 = scalar_lea.hbm %s5209_s0, 128  ;;  %p4635_p13 = scmp.lt.u32.totalorder %s4996_s10, %s5209_s0 }
  0x88   : > { %p4632_p12 = pnand %p4631_p11, %p4630_p8  ;;  %p4636_p6 = scmp.lt.u32.totalorder %s4634_s16, %s4629_s2 }
  0x89   : > { %p4638_p0 = scmp.lt.u32.totalorder %s4629_s2, %s4996_s10 }
  0x8a   : > { %p4633_p1 = pneg %p4632_p12  ;;  %p4637_p3 = por %p4636_p6, %p4635_p13 }
  0x8c   : > { %p4639_p7 = por %p4638_p0, %p4637_p3 }
  0x8e   : > { %p4640_p5 = pnand %p4639_p7, %p4633_p1 }
  0x90   : > { %4643 = shalt.err (!%p4640_p5)
}
  0x91   : > { %s4644_s11 = scalar_lea.vmem %s5004_s15, 64  ;;  %s4761_s1 = smov [#allocation3]  }
  0x92   : > { %p4645_p8 = scmp.ne.s32.totalorder %s5004_s15, %s4644_s11  ;;  %s4649_s17 = sshll.u32 %s4761_s1, 4  ;;  %s4650_s17 = int_to_ptr.vmem [resolvable:$false] %s4649_s17 }
  0x93   : > { %s4651_s13 = scalar_lea.vmem %s4650_s17, 128  ;;  %p4652_p4 = scmp.lt.s32.totalorder %s5004_s15, %s4650_s17 }
  0x94   : > { %p4647_p12 = pnand %p4645_p8, %p4631_p11  ;;  %p4653_p13 = scmp.lt.s32.totalorder %s4651_s13, %s4644_s11 }
  0x96   : > { %p4648_p9 = pneg %p4647_p12  ;;  %p4654_p6 = por %p4653_p13, %p4652_p4 }
  0x98   : > { %p4655_p3 = pnand %p4654_p6, %p4648_p9 }
  0x9a   : > { %4658 = shalt.err (!%p4655_p3)
}
  0x9b   : > { %3999 = dma.hbm_to_vmem [thread:$0]  (!%p5000_p10), %s4996_s10, 64, %s5004_s15, %s301_s19  }
  0x9c   : > { %p5237_p1 = scmp.ne.s32.totalorder %s5225_s9, 0 }
  0x9d   : > { %s5034_s2 = sand.u32 (!%p5237_p1), 1, %s4733_s25  }
  0x9e   : > { %321 = sbr.rel (%p5237_p1) target bundleno = 1153 (0x481), region = 48  ;;  %s3527_s16 = sshll.u32 (!%p5237_p1), %s5034_s2, 2 }
  0x9f   : > { %s324_s20 = scalar_lea.sflag (!%p5237_p1), [#allocation4], %s5034_s2  ;;  %s5040_s14 = scalar_lea.vmem (!%p5237_p1), [#allocation3], %s3527_s16 }
  0xa5   : > { %4712 = dma.done.wait (%p4975_p2), %s324_s20, 64  }
  0xa6   : > { %4714 = vsyncadd (%p4975_p2), %s324_s20, 4294967232  ;;  %p5238_p4 = scmp.ne.s32.totalorder %s5224_s8, 0 }
  0xa8   : > { %4716 = dma.done.wait (%p5238_p4), [#allocation7], 8320  }
  0xa9   : > { %4718 = vsyncadd (%p5238_p4), [#allocation7], 4294958976 }
  0xaa   : > { %4720 = dma.done.wait (%p5238_p4), [#allocation10], 36864  }
  0xab   : > { %4722 = vsyncadd (%p5238_p4), [#allocation10], 4294930432  ;;  %v4762_v0 = vmov 0   ;;  %v401_v1 = vld [vmem:[#allocation6] sm:$0xff]  ;;  %v402_v14 = vld [vmem:[#allocation6 + $0x8] sm:$0xff]  ;;  %s3888_s15 = sshll.u32 %s4741_s27, 6 }
  0xac   : > { %817 = vmatprep.mubr.bf16.mxu0 %v4762_v0  ;;  %858 = vmatprep.mubr.bf16.mxu1 %v4762_v0  ;;  %v405_v2 = vld [vmem:[#allocation6 + $0x20] sm:$0xff]  ;;  %v406_v15 = vld [vmem:[#allocation6 + $0x28] sm:$0xff]  ;;  %v403_v58 = vld [vmem:[#allocation6 + $0x10] sm:$0xff]  ;;  %s373_s12 = scalar_lea.vmem [#allocation12], %s3527_s16  ;;  %s5160_s17 = scalar_lea.hbm %s5216_s7, %s3888_s15 }
  0xad   : > { %v409_v3 = vld [vmem:[#allocation6 + $0x40] sm:$0xff]  ;;  %v3534_v4 = vcombine.high %v401_v1, %v405_v2  ;;  %v3533_v5 = vcombine.low %v401_v1, %v405_v2  ;;  %v410_v16 = vld [vmem:[#allocation6 + $0x48] sm:$0xff]  ;;  %v3536_v18 = vcombine.high %v402_v14, %v406_v15  ;;  %v3535_v19 = vcombine.low %v402_v14, %v406_v15  ;;  %v407_v59 = vld [vmem:[#allocation6 + $0x30] sm:$0xff]  ;;  %s3397_s19 = sshll.u32 %s373_s12, 4  ;;  %s3384_s13 = scalar_lea.sflag [#allocation5], %s5034_s2  ;;  %s5162_s19 = int_to_ptr.vmem [resolvable:$true] %s3397_s19 }
  0xae   : > { %v413_v6 = vld [vmem:[#allocation6 + $0x60] sm:$0xff]  ;;  %v414_v17 = vld [vmem:[#allocation6 + $0x68] sm:$0xff]  ;;  %v3538_v1 = vcombine.high %v403_v58, %v407_v59  ;;  %v5057_v2 = vld [vmem:[%s5040_s14] sm:$0xf]  ;;  %s4659_s20 = scalar_lea.vmem %s5162_s19, 64  ;;  %p5239_p9 = scmp.ne.s32.totalorder %s5234_s21, 0 }
  0xaf   : > { %v3542_v7 = vcombine.high %v409_v3, %v413_v6  ;;  %v417_v8 = vld [vmem:[#allocation6 + $0x80] sm:$0xff]  ;;  %785 = vmatprep.subr.bf16.mxu0 %v3534_v4  ;;  %v3541_v10 = vcombine.low %v409_v3, %v413_v6  ;;  %v3544_v20 = vcombine.high %v410_v16, %v414_v17  ;;  %v418_v22 = vld [vmem:[#allocation6 + $0x88] sm:$0xff]  ;;  %826 = vmatprep.subr.bf16.mxu1 %v3536_v18  ;;  %v411_v4 = vld [vmem:[#allocation6 + $0x50] sm:$0xff]  ;;  %p4660_p2 = scmp.ne.s32.totalorder %s5162_s19, %s4659_s20  ;;  %s4763_s27 = smov [#allocation12]  }
  0xb0   : > { %v421_v9 = vld [vmem:[#allocation6 + $0xa0] sm:$0xff]  ;;  %786 = vmatpush1.bf16.msra.mxu0 %v3533_v5  ;;  %v422_v23 = vld [vmem:[#allocation6 + $0xa8] sm:$0xff]  ;;  %827 = vmatpush1.bf16.msra.mxu1 %v3535_v19  ;;  %v3543_v27 = vcombine.low %v410_v16, %v414_v17  ;;  %v415_v5 = vld [vmem:[#allocation6 + $0x70] sm:$0xff]  ;;  %s4663_s16 = sshll.u32 %s4763_s27, 4  ;;  %s4664_s16 = int_to_ptr.vmem [resolvable:$false] %s4663_s16 }
  0xb1   : > { %787 = vmatprep.subr.bf16.mxu0 %v3542_v7  ;;  %v3550_v11 = vcombine.high %v417_v8, %v421_v9  ;;  %v425_v12 = vld [vmem:[#allocation6 + $0xc0] sm:$0xff]  ;;  %v3549_v21 = vcombine.low %v417_v8, %v421_v9  ;;  %828 = vmatprep.subr.bf16.mxu1 %v3544_v20  ;;  %v3552_v28 = vcombine.high %v418_v22, %v422_v23  ;;  %v426_v30 = vld [vmem:[#allocation6 + $0xc8] sm:$0xff]  ;;  %v404_v7 = vld [vmem:[#allocation6 + $0x18] sm:$0xff]  ;;  %p4661_p10 = pnand %p4660_p2, %p5239_p9  ;;  %s4665_s14 = scalar_lea.vmem %s4664_s16, 128 }
  0xb2   : > { %v429_v13 = vld [vmem:[#allocation6 + $0xe0] sm:$0xff]  ;;  %v430_v31 = vld [vmem:[#allocation6 + $0xe8] sm:$0xff]  ;;  %v3551_v35 = vcombine.low %v418_v22, %v422_v23  ;;  %v3537_v8 = vcombine.low %v403_v58, %v407_v59  ;;  %v408_v9 = vld [vmem:[#allocation6 + $0x38] sm:$0xff]  ;;  %v3545_v16 = vcombine.low %v411_v4, %v415_v5  ;;  %p4666_p0 = scmp.lt.s32.totalorder %s5162_s19, %s4664_s16  ;;  %p4667_p7 = scmp.lt.s32.totalorder %s4665_s14, %s4659_s20 }
  0xb3   : > { %v3558_v24 = vcombine.high %v425_v12, %v429_v13  ;;  %v433_v25 = vld [vmem:[#allocation6 + $0x100] sm:$0xff]  ;;  %v3557_v29 = vcombine.low %v425_v12, %v429_v13  ;;  %v3560_v36 = vcombine.high %v426_v30, %v430_v31  ;;  %v434_v38 = vld [vmem:[#allocation6 + $0x108] sm:$0xff]  ;;  %v3559_v43 = vcombine.low %v426_v30, %v430_v31  ;;  %v419_v12 = vld [vmem:[#allocation6 + $0x90] sm:$0xff]  ;;  %p4662_p11 = pneg %p4661_p10 }
  0xb4   : > { %788 = vmatpush1.bf16.msra.mxu0 %v3541_v10  ;;  %v437_v26 = vld [vmem:[#allocation6 + $0x120] sm:$0xff]  ;;  %829 = vmatpush1.bf16.msra.mxu1 %v3543_v27  ;;  %v438_v39 = vld [vmem:[#allocation6 + $0x128] sm:$0xff]  ;;  %v3546_v10 = vcombine.high %v411_v4, %v415_v5  ;;  %v423_v13 = vld [vmem:[#allocation6 + $0xb0] sm:$0xff]  ;;  %v3540_v14 = vcombine.high %v404_v7, %v408_v9  ;;  %p4668_p5 = por %p4667_p7, %p4666_p0 }
  0xb5   : > { %789 = vmatprep.subr.bf16.mxu0 %v3550_v11  ;;  %v3566_v32 = vcombine.high %v433_v25, %v437_v26  ;;  %v441_v33 = vld [vmem:[#allocation6 + $0x140] sm:$0xff]  ;;  %830 = vmatprep.subr.bf16.mxu1 %v3552_v28  ;;  %v3565_v37 = vcombine.low %v433_v25, %v437_v26  ;;  %v3568_v44 = vcombine.high %v434_v38, %v438_v39  ;;  %v442_v46 = vld [vmem:[#allocation6 + $0x148] sm:$0xff]  ;;  %v412_v15 = vld [vmem:[#allocation6 + $0x58] sm:$0xff] }
  0xb6   : > { %v445_v34 = vld [vmem:[#allocation6 + $0x160] sm:$0xff]  ;;  %v446_v47 = vld [vmem:[#allocation6 + $0x168] sm:$0xff]  ;;  %v3567_v51 = vcombine.low %v434_v38, %v438_v39  ;;  %v416_v17 = vld [vmem:[#allocation6 + $0x78] sm:$0xff]  ;;  %v3554_v18 = vcombine.high %v419_v12, %v423_v13  ;;  %p4669_p8 = pnand %p4668_p5, %p4662_p11 }
  0xb7   : > { %v3574_v40 = vcombine.high %v441_v33, %v445_v34  ;;  %v449_v41 = vld [vmem:[#allocation6 + $0x180] sm:$0xff]  ;;  %v3573_v45 = vcombine.low %v441_v33, %v445_v34  ;;  %v3576_v52 = vcombine.high %v442_v46, %v446_v47  ;;  %v450_v53 = vld [vmem:[#allocation6 + $0x188] sm:$0xff]  ;;  %v3575_v57 = vcombine.low %v442_v46, %v446_v47  ;;  %v427_v19 = vld [vmem:[#allocation6 + $0xd0] sm:$0xff] }
  0xb8   : > { %790 = vmatpush1.bf16.msra.mxu0 %v3549_v21  ;;  %v453_v42 = vld [vmem:[#allocation6 + $0x1a0] sm:$0xff]  ;;  %831 = vmatpush1.bf16.msra.mxu1 %v3551_v35  ;;  %v454_v55 = vld [vmem:[#allocation6 + $0x1a8] sm:$0xff]  ;;  %v431_v20 = vld [vmem:[#allocation6 + $0xf0] sm:$0xff]  ;;  %v3539_v21 = vcombine.low %v404_v7, %v408_v9  ;;  %v3548_v22 = vcombine.high %v412_v15, %v416_v17 }
  0xb9   : > { %791 = vmatprep.subr.bf16.mxu0 %v3558_v24  ;;  %832 = vmatprep.subr.bf16.mxu1 %v3560_v36  ;;  %v3582_v48 = vcombine.high %v449_v41, %v453_v42  ;;  %v457_v49 = vld [vmem:[#allocation6 + $0x1c0] sm:$0xff]  ;;  %v3581_v54 = vcombine.low %v449_v41, %v453_v42  ;;  %v3584_v60 = vcombine.high %v450_v53, %v454_v55  ;;  %v458_v61 = vld [vmem:[#allocation6 + $0x1c8] sm:$0xff]  ;;  %v420_v23 = vld [vmem:[#allocation6 + $0x98] sm:$0xff] }
  0xba   : > { %v461_v50 = vld [vmem:[#allocation6 + $0x1e0] sm:$0xff]  ;;  %v462_v63 = vld [vmem:[#allocation6 + $0x1e8] sm:$0xff]  ;;  %v3583_v3 = vcombine.low %v450_v53, %v454_v55  ;;  %v3553_v24 = vcombine.low %v419_v12, %v423_v13  ;;  %v424_v25 = vld [vmem:[#allocation6 + $0xb8] sm:$0xff]  ;;  %v3562_v26 = vcombine.high %v427_v19, %v431_v20  ;;  %v3561_v33 = vcombine.low %v427_v19, %v431_v20 }
  0xbb   : > { %v3590_v56 = vcombine.high %v457_v49, %v461_v50  ;;  %v3589_v62 = vcombine.low %v457_v49, %v461_v50  ;;  %v3592_v6 = vcombine.high %v458_v61, %v462_v63  ;;  %v3591_v11 = vcombine.low %v458_v61, %v462_v63  ;;  %v435_v27 = vld [vmem:[#allocation6 + $0x110] sm:$0xff]  ;;  %v428_v30 = vld [vmem:[#allocation6 + $0xd8] sm:$0xff] }
  0xbc   : > { %792 = vmatpush1.bf16.msra.mxu0 %v3557_v29  ;;  %833 = vmatpush1.bf16.msra.mxu1 %v3559_v43  ;;  %v439_v28 = vld [vmem:[#allocation6 + $0x130] sm:$0xff]  ;;  %v3547_v29 = vcombine.low %v412_v15, %v416_v17  ;;  %v432_v31 = vld [vmem:[#allocation6 + $0xf8] sm:$0xff] }
  0xbd   : > { %793 = vmatprep.subr.bf16.mxu0 %v3566_v32  ;;  %834 = vmatprep.subr.bf16.mxu1 %v3568_v44  ;;  %v3556_v32 = vcombine.high %v420_v23, %v424_v25  ;;  %v443_v34 = vld [vmem:[#allocation6 + $0x150] sm:$0xff]  ;;  %v3570_v36 = vcombine.high %v435_v27, %v439_v28  ;;  %v436_v38 = vld [vmem:[#allocation6 + $0x118] sm:$0xff]  ;;  %v3569_v41 = vcombine.low %v435_v27, %v439_v28 }
  0xbe   : > { %v447_v35 = vld [vmem:[#allocation6 + $0x170] sm:$0xff]  ;;  %v440_v39 = vld [vmem:[#allocation6 + $0x138] sm:$0xff]  ;;  %v3563_v44 = vcombine.low %v428_v30, %v432_v31 }
  0xbf   : > { %v451_v42 = vld [vmem:[#allocation6 + $0x190] sm:$0xff]  ;;  %v448_v46 = vld [vmem:[#allocation6 + $0x178] sm:$0xff]  ;;  %v3572_v47 = vcombine.high %v436_v38, %v440_v39 }
  0xc0   : > { %794 = vmatpush1.bf16.msra.mxu0 %v3565_v37  ;;  %835 = vmatpush1.bf16.msra.mxu1 %v3567_v51  ;;  %v3555_v37 = vcombine.low %v420_v23, %v424_v25  ;;  %v455_v43 = vld [vmem:[#allocation6 + $0x1b0] sm:$0xff]  ;;  %v452_v53 = vld [vmem:[#allocation6 + $0x198] sm:$0xff] }
  0xc1   : > { %795 = vmatprep.subr.bf16.mxu0 %v3574_v40  ;;  %836 = vmatprep.subr.bf16.mxu1 %v3576_v52  ;;  %v3564_v40 = vcombine.high %v428_v30, %v432_v31  ;;  %v459_v49 = vld [vmem:[#allocation6 + $0x1d0] sm:$0xff]  ;;  %v3586_v51 = vcombine.high %v451_v42, %v455_v43  ;;  %v3571_v52 = vcombine.low %v436_v38, %v440_v39  ;;  %v460_v59 = vld [vmem:[#allocation6 + $0x1d8] sm:$0xff] }
  0xc2   : > { %v463_v50 = vld [vmem:[#allocation6 + $0x1f0] sm:$0xff]  ;;  %v4081_v5 = vld [vmem:[#allocation9 + $0x24] ss:$16 sps:$4 sm:$0xff]   ;;  %v4085_v12 = vld [vmem:[#allocation9 + $0x40] ss:$16 sps:$4 sm:$0xff]  }
  0xc3   : > { %v3593_v63 = vcombine.low %v459_v49, %v463_v50  ;;  %v4087_v9 = vld [vmem:[#allocation9 + $0x44] ss:$16 sps:$4 sm:$0xff]   ;;  %v4090_v15 = vld [vmem:[#allocation9 + $0x4c] ss:$16 sps:$4 sm:$0xff]   ;;  %v4097_v20 = vld [vmem:[#allocation9 + $0x80] ss:$16 sps:$4 sm:$0xff]  }
  0xc4   : > { %796 = vmatpush1.bf16.msra.mxu0 %v3573_v45  ;;  %837 = vmatpush1.bf16.msra.mxu1 %v3575_v57  ;;  %v444_v45 = vld [vmem:[#allocation6 + $0x158] sm:$0xff]  ;;  %v3594_v57 = vcombine.high %v459_v49, %v463_v50  ;;  %v4096_v19 = vld [vmem:[#allocation9 + $0x6c] ss:$16 sps:$4 sm:$0xff]   ;;  %v4100_v25 = vld [vmem:[#allocation9 + $0x88] ss:$16 sps:$4 sm:$0xff]  }
  0xc5   : > { %797 = vmatprep.subr.bf16.mxu0 %v3582_v48  ;;  %838 = vmatprep.subr.bf16.mxu1 %v3584_v60  ;;  %v3577_v48 = vcombine.low %v443_v34, %v447_v35  ;;  %v3580_v55 = vcombine.high %v444_v45, %v448_v46  ;;  %v3579_v58 = vcombine.low %v444_v45, %v448_v46  ;;  %v464_v60 = vld [vmem:[#allocation6 + $0x1f8] sm:$0xff]  ;;  %v4102_v23 = vld [vmem:[#allocation9 + $0x8c] ss:$16 sps:$4 sm:$0xff]   ;;  %v4124_v38 = vld [vmem:[#allocation9 + $0x108] ss:$16 sps:$4 sm:$0xff]  }
  0xc6   : > { %v3596_v4 = vcombine.high %v460_v59, %v464_v60  ;;  %v3595_v7 = vcombine.low %v460_v59, %v464_v60  ;;  %v4093_v13 = vld [vmem:[#allocation9 + $0x64] ss:$16 sps:$4 sm:$0xff]   ;;  %v4109_v27 = vld [vmem:[#allocation9 + $0xc0] ss:$16 sps:$4 sm:$0xff]   ;;  %v4114_v30 = vld [vmem:[#allocation9 + $0xcc] ss:$16 sps:$4 sm:$0xff]  }
  0xc7   : > { %v4099_v17 = vld [vmem:[#allocation9 + $0x84] ss:$16 sps:$4 sm:$0xff]   ;;  %v4115_v31 = vld [vmem:[#allocation9 + $0xe0] ss:$16 sps:$4 sm:$0xff]   ;;  %v4136_v45 = vld [vmem:[#allocation9 + $0x148] ss:$16 sps:$4 sm:$0xff]  }
  0xc8   : > { %798 = vmatpush1.bf16.msra.mxu0 %v3581_v54  ;;  %839 = vmatpush1.bf16.msra.mxu1 %v3583_v3  ;;  %v456_v54 = vld [vmem:[#allocation6 + $0x1b8] sm:$0xff]  ;;  %v4142_v49 = vld [vmem:[#allocation9 + $0x168] ss:$16 sps:$4 sm:$0xff]   ;;  %v4162_v59 = vld [vmem:[#allocation9 + $0x1cc] ss:$16 sps:$4 sm:$0xff]  }
  0xc9   : > { %799 = vmatprep.subr.bf16.mxu0 %v3590_v56  ;;  %840 = vmatprep.subr.bf16.mxu1 %v3592_v6  ;;  %v3585_v56 = vcombine.low %v451_v42, %v455_v43  ;;  %v3588_v61 = vcombine.high %v452_v53, %v456_v54  ;;  %v4073_v3 = vld [vmem:[#allocation9] ss:$16 sps:$4 sm:$0xff]   ;;  %v4078_v6 = vld [vmem:[#allocation9 + $0xc] ss:$16 sps:$4 sm:$0xff]   ;;  %v4117_v28 = vld [vmem:[#allocation9 + $0xe4] ss:$16 sps:$4 sm:$0xff]  }
  0xca   : > { %v4129_v39 = vld [vmem:[#allocation9 + $0x124] ss:$16 sps:$4 sm:$0xff]   ;;  %v4130_v42 = vld [vmem:[#allocation9 + $0x128] ss:$16 sps:$4 sm:$0xff]   ;;  %v4145_v50 = vld [vmem:[#allocation9 + $0x180] ss:$16 sps:$4 sm:$0xff]  }
  0xcb   : > { %v4135_v43 = vld [vmem:[#allocation9 + $0x144] ss:$16 sps:$4 sm:$0xff]   ;;  %v4157_v60 = vld [vmem:[#allocation9 + $0x1c0] ss:$16 sps:$4 sm:$0xff]  }
  0xcc   : > { %800 = vmatpush1.bf16.msra.mxu0 %v3589_v62  ;;  %841 = vmatpush1.bf16.msra.mxu1 %v3591_v11  ;;  %v4075_v62 = vld [vmem:[#allocation9 + $0x4] ss:$16 sps:$4 sm:$0xff]   ;;  %v4084_v11 = vld [vmem:[#allocation9 + $0x2c] ss:$16 sps:$4 sm:$0xff]  }
  0xcd   : > { %867 = vmatprep.subr.bf16.mxu0 %v3538_v1  ;;  %908 = vmatprep.subr.bf16.mxu1 %v3540_v14  ;;  %v3587_v1 = vcombine.low %v452_v53, %v456_v54  ;;  %v4082_v14 = vld [vmem:[#allocation9 + $0x28] ss:$16 sps:$4 sm:$0xff]   ;;  %v4141_v46 = vld [vmem:[#allocation9 + $0x164] ss:$16 sps:$4 sm:$0xff]   ;;  %v4150_v53 = vld [vmem:[#allocation9 + $0x18c] ss:$16 sps:$4 sm:$0xff]  }
  0xce   : > { %v4153_v54 = vld [vmem:[#allocation9 + $0x1a4] ss:$16 sps:$4 sm:$0xff]  }
  0xcf   : > { %818 = vmatmul.mubr.bf16.vlgmr.msra.gmra.mrb[0].mxu0 %v5057_v2  ;;  %859 = vmatmul.mubr.bf16.vlgmr.msra.gmra.mrb[0].mxu1 %v5057_v2 }
  0xd0   : > { %868 = vmatpush1.bf16.msra.mxu0 %v3537_v8  ;;  %899 = vmatprep.mubr.bf16.mxu0 %v4762_v0  ;;  %v4079_v8 = vld [vmem:[#allocation9 + $0x20] ss:$16 sps:$4 sm:$0xff]  }
  0xd1   : > { %869 = vmatprep.subr.bf16.mxu0 %v3546_v10  ;;  %909 = vmatpush1.bf16.msra.mxu1 %v3539_v21  ;;  %v4076_v10 = vld [vmem:[#allocation9 + $0x8] ss:$16 sps:$4 sm:$0xff]   ;;  %v4105_v21 = vld [vmem:[#allocation9 + $0xa4] ss:$16 sps:$4 sm:$0xff]  }
  0xd2   : > { %940 = vmatprep.mubr.bf16.mxu1 %v4762_v0  ;;  %910 = vmatprep.subr.bf16.mxu1 %v3548_v22  ;;  %v3578_v0 = vcombine.high %v443_v34, %v447_v35  ;;  %v4094_v22 = vld [vmem:[#allocation9 + $0x68] ss:$16 sps:$4 sm:$0xff]   ;;  %v4123_v35 = vld [vmem:[#allocation9 + $0x104] ss:$16 sps:$4 sm:$0xff]  }
  0xd3   : > { %v4118_v34 = vld [vmem:[#allocation9 + $0xe8] ss:$16 sps:$4 sm:$0xff]  }
  0xd4   : > { %870 = vmatpush1.bf16.msra.mxu0 %v3545_v16  ;;  %v4091_v16 = vld [vmem:[#allocation9 + $0x60] ss:$16 sps:$4 sm:$0xff]  }
  0xd5   : > { %871 = vmatprep.subr.bf16.mxu0 %v3554_v18  ;;  %911 = vmatpush1.bf16.msra.mxu1 %v3547_v29  ;;  %v4088_v18 = vld [vmem:[#allocation9 + $0x48] ss:$16 sps:$4 sm:$0xff]  }
  0xd6   : > { %912 = vmatprep.subr.bf16.mxu1 %v3556_v32  ;;  %v4106_v29 = vld [vmem:[#allocation9 + $0xa8] ss:$16 sps:$4 sm:$0xff]  }
  0xd7   : > { %v4112_v32 = vld [vmem:[#allocation9 + $0xc8] ss:$16 sps:$4 sm:$0xff]  }
  0xd8   : > { %872 = vmatpush1.bf16.msra.mxu0 %v3553_v24  ;;  %v4111_v24 = vld [vmem:[#allocation9 + $0xc4] ss:$16 sps:$4 sm:$0xff]  }
  0xd9   : > { %873 = vmatprep.subr.bf16.mxu0 %v3562_v26  ;;  %913 = vmatpush1.bf16.msra.mxu1 %v3555_v37  ;;  %v4108_v26 = vld [vmem:[#allocation9 + $0xac] ss:$16 sps:$4 sm:$0xff]   ;;  %v4121_v37 = vld [vmem:[#allocation9 + $0x100] ss:$16 sps:$4 sm:$0xff]  }
  0xda   : > { %914 = vmatprep.subr.bf16.mxu1 %v3564_v40  ;;  %v4132_v40 = vld [vmem:[#allocation9 + $0x12c] ss:$16 sps:$4 sm:$0xff]  }
  0xdc   : > { %874 = vmatpush1.bf16.msra.mxu0 %v3561_v33  ;;  %v4120_v33 = vld [vmem:[#allocation9 + $0xec] ss:$16 sps:$4 sm:$0xff]  }
  0xdd   : > { %875 = vmatprep.subr.bf16.mxu0 %v3570_v36  ;;  %915 = vmatpush1.bf16.msra.mxu1 %v3563_v44  ;;  %v4126_v36 = vld [vmem:[#allocation9 + $0x10c] ss:$16 sps:$4 sm:$0xff]   ;;  %v4133_v44 = vld [vmem:[#allocation9 + $0x140] ss:$16 sps:$4 sm:$0xff]  }
  0xde   : > { %916 = vmatprep.subr.bf16.mxu1 %v3572_v47  ;;  %v4144_v47 = vld [vmem:[#allocation9 + $0x16c] ss:$16 sps:$4 sm:$0xff]  }
  0xe0   : > { %876 = vmatpush1.bf16.msra.mxu0 %v3569_v41  ;;  %v4127_v41 = vld [vmem:[#allocation9 + $0x120] ss:$16 sps:$4 sm:$0xff]  }
  0xe1   : > { %877 = vmatprep.subr.bf16.mxu0 %v3578_v0  ;;  %917 = vmatpush1.bf16.msra.mxu1 %v3571_v52  ;;  %v4138_v0 = vld [vmem:[#allocation9 + $0x14c] ss:$16 sps:$4 sm:$0xff]   ;;  %v4148_v52 = vld [vmem:[#allocation9 + $0x188] ss:$16 sps:$4 sm:$0xff]  }
  0xe2   : > { %918 = vmatprep.subr.bf16.mxu1 %v3580_v55  ;;  %v4156_v55 = vld [vmem:[#allocation9 + $0x1ac] ss:$16 sps:$4 sm:$0xff]  }
  0xe4   : > { %878 = vmatpush1.bf16.msra.mxu0 %v3577_v48  ;;  %v4139_v48 = vld [vmem:[#allocation9 + $0x160] ss:$16 sps:$4 sm:$0xff]  }
  0xe5   : > { %879 = vmatprep.subr.bf16.mxu0 %v3586_v51  ;;  %919 = vmatpush1.bf16.msra.mxu1 %v3579_v58  ;;  %v4147_v51 = vld [vmem:[#allocation9 + $0x184] ss:$16 sps:$4 sm:$0xff]  }
  0xe6   : > { %920 = vmatprep.subr.bf16.mxu1 %v3588_v61  ;;  %v4159_v58 = vld [vmem:[#allocation9 + $0x1c4] ss:$16 sps:$4 sm:$0xff]   ;;  %v4160_v61 = vld [vmem:[#allocation9 + $0x1c8] ss:$16 sps:$4 sm:$0xff]  }
  0xe8   : > { %880 = vmatpush1.bf16.msra.mxu0 %v3585_v56  ;;  %v4151_v56 = vld [vmem:[#allocation9 + $0x1a0] ss:$16 sps:$4 sm:$0xff]  }
  0xe9   : > { %881 = vmatprep.subr.bf16.mxu0 %v3594_v57  ;;  %921 = vmatpush1.bf16.msra.mxu1 %v3587_v1  ;;  %v4154_v57 = vld [vmem:[#allocation9 + $0x1a8] ss:$16 sps:$4 sm:$0xff]   ;;  %v4163_v1 = vld [vmem:[#allocation9 + $0x1e0] ss:$16 sps:$4 sm:$0xff]  }
  0xea   : > { %922 = vmatprep.subr.bf16.mxu1 %v3596_v4  ;;  %v4171_v4 = vld [vmem:[#allocation9 + $0x204] ss:$16 sps:$4 sm:$0xff]  }
  0xec   : > { %882 = vmatpush1.bf16.msra.mxu0 %v3593_v63  ;;  %v4168_v63 = vld [vmem:[#allocation9 + $0x1ec] ss:$16 sps:$4 sm:$0xff]  }
  0xed   : > { %2664 = vmatprep.subr.bf16.mxu0 %v4075_v62  ;;  %923 = vmatpush1.bf16.msra.mxu1 %v3595_v7  ;;  %v4165_v62 = vld [vmem:[#allocation9 + $0x1e4] ss:$16 sps:$4 sm:$0xff]  }
  0xee   : > { %2828 = vmatprep.subr.bf16.mxu1 %v4078_v6  ;;  %v978_v6 = vlaneseq }
  0xef   : > { %900 = vmatmul.mubr.bf16.vlgmr.msra.gmra.mrb[4].mxu0 %v5057_v2 }
  0xf0   : > { %2665 = vmatpush1.bf16.msra.mxu0 %v4073_v3  ;;  %941 = vmatmul.mubr.bf16.vlgmr.msra.gmra.mrb[4].mxu1 %v5057_v2  ;;  %v4103_v2 = vld [vmem:[#allocation9 + $0xa0] ss:$16 sps:$4 sm:$0xff]   ;;  %v4166_v3 = vld [vmem:[#allocation9 + $0x1e8] ss:$16 sps:$4 sm:$0xff]   ;;  %v5065_v7 = vshrl.u32 %v978_v6, 7 }
  0xf1   : > { %2666 = vmatprep.subr.bf16.mxu0 %v4081_v5  ;;  %2829 = vmatpush1.bf16.msra.mxu1 %v4076_v10  ;;  %v4174_v5 = vld [vmem:[#allocation9 + $0x20c] ss:$16 sps:$4 sm:$0xff]  }
  0xf2   : > { %2830 = vmatprep.subr.bf16.mxu1 %v4084_v11  ;;  %v984_v10 = vsub.s32 1, %v5065_v7 }
  0xf4   : > { %2667 = vmatpush1.bf16.msra.mxu0 %v4079_v8  ;;  %v980_v8 = vsub.s32 0, %v5065_v7 }
  0xf5   : > { %2668 = vmatprep.subr.bf16.mxu0 %v4087_v9  ;;  %2831 = vmatpush1.bf16.msra.mxu1 %v4082_v14  ;;  %v5068_v9 = vld [vmem:[#allocation8] sm:$0xff]  ;;  %v992_v14 = vsub.s32 3, %v5065_v7 }
  0xf6   : > { %2832 = vmatprep.subr.bf16.mxu1 %v4090_v15  ;;  %v981_v11 = vrot.slane %v5068_v9, %v980_v8 }
  0xf8   : > { %2669 = vmatpush1.bf16.msra.mxu0 %v4085_v12  ;;  %v985_v12 = vrot.slane %v5068_v9, %v984_v10 }
  0xf9   : > { %2670 = vmatprep.subr.bf16.mxu0 %v4093_v13  ;;  %2833 = vmatpush1.bf16.msra.mxu1 %v4088_v18 }
  0xfa   : > { %2834 = vmatprep.subr.bf16.mxu1 %v4096_v19 }
  0xfc   : > { %2671 = vmatpush1.bf16.msra.mxu0 %v4091_v16 }
  0xfd   : > { %2672 = vmatprep.subr.bf16.mxu0 %v4099_v17  ;;  %2835 = vmatpush1.bf16.msra.mxu1 %v4094_v22  ;;  %v993_v22 = vrot.slane %v5068_v9, %v992_v14 }
  0xfe   : > { %2836 = vmatprep.subr.bf16.mxu1 %v4102_v23 }
 0x100   : > { %2673 = vmatpush1.bf16.msra.mxu0 %v4097_v20 }
 0x101   : > { %2674 = vmatprep.subr.bf16.mxu0 %v4105_v21  ;;  %2837 = vmatpush1.bf16.msra.mxu1 %v4100_v25 }
 0x102   : > { %2838 = vmatprep.subr.bf16.mxu1 %v4108_v26 }
 0x104   : > { %2675 = vmatpush1.bf16.msra.mxu0 %v4103_v2 }
 0x105   : > { %2676 = vmatprep.subr.bf16.mxu0 %v4111_v24  ;;  %2839 = vmatpush1.bf16.msra.mxu1 %v4106_v29 }
 0x106   : > { %2840 = vmatprep.subr.bf16.mxu1 %v4114_v30 }
 0x108   : > { %2677 = vmatpush1.bf16.msra.mxu0 %v4109_v27 }
 0x109   : > { %2678 = vmatprep.subr.bf16.mxu0 %v4117_v28  ;;  %2841 = vmatpush1.bf16.msra.mxu1 %v4112_v32 }
 0x10a   : > { %2842 = vmatprep.subr.bf16.mxu1 %v4120_v33 }
 0x10c   : > { %2679 = vmatpush1.bf16.msra.mxu0 %v4115_v31 }
 0x10d   : > { %2843 = vmatpush1.bf16.msra.mxu1 %v4118_v34  ;;  %2680 = vmatprep.subr.bf16.mxu0 %v4123_v35 }
 0x10e   : > { %2844 = vmatprep.subr.bf16.mxu1 %v4126_v36 }
 0x110   : > { %2681 = vmatpush1.bf16.msra.mxu0 %v4121_v37 }
 0x111   : > { %2845 = vmatpush1.bf16.msra.mxu1 %v4124_v38  ;;  %2682 = vmatprep.subr.bf16.mxu0 %v4129_v39 }
 0x112   : > { %2846 = vmatprep.subr.bf16.mxu1 %v4132_v40 }
 0x114   : > { %2683 = vmatpush1.bf16.msra.mxu0 %v4127_v41 }
 0x115   : > { %2847 = vmatpush1.bf16.msra.mxu1 %v4130_v42  ;;  %2684 = vmatprep.subr.bf16.mxu0 %v4135_v43 }
 0x116   : > { %2848 = vmatprep.subr.bf16.mxu1 %v4138_v0 }
 0x118   : > { %2685 = vmatpush1.bf16.msra.mxu0 %v4133_v44 }
 0x119   : > { %2849 = vmatpush1.bf16.msra.mxu1 %v4136_v45  ;;  %2686 = vmatprep.subr.bf16.mxu0 %v4141_v46 }
 0x11a   : > { %2850 = vmatprep.subr.bf16.mxu1 %v4144_v47 }
 0x11c   : > { %2687 = vmatpush1.bf16.msra.mxu0 %v4139_v48 }
 0x11d   : > { %2851 = vmatpush1.bf16.msra.mxu1 %v4142_v49  ;;  %2688 = vmatprep.subr.bf16.mxu0 %v4147_v51  ;;  %v4169_v49 = vld [vmem:[#allocation9 + $0x200] ss:$16 sps:$4 sm:$0xff]  }
 0x11e   : > { %2852 = vmatprep.subr.bf16.mxu1 %v4150_v53 }
 0x120   : > { %2689 = vmatpush1.bf16.msra.mxu0 %v4145_v50  ;;  %v4172_v50 = vld [vmem:[#allocation9 + $0x208] ss:$16 sps:$4 sm:$0xff]  }
 0x121   : > { %2853 = vmatpush1.bf16.msra.mxu1 %v4148_v52  ;;  %2690 = vmatprep.subr.bf16.mxu0 %v4153_v54  ;;  %v4177_v54 = vld [vmem:[#allocation9 + $0x224] ss:$16 sps:$4 sm:$0xff]  }
 0x122   : > { %2854 = vmatprep.subr.bf16.mxu1 %v4156_v55  ;;  %v4180_v55 = vld [vmem:[#allocation9 + $0x22c] ss:$16 sps:$4 sm:$0xff]  }
 0x124   : > { %2691 = vmatpush1.bf16.msra.mxu0 %v4151_v56 }
 0x125   : > { %2855 = vmatpush1.bf16.msra.mxu1 %v4154_v57  ;;  %2692 = vmatprep.subr.bf16.mxu0 %v4159_v58 }
 0x126   : > { %2856 = vmatprep.subr.bf16.mxu1 %v4162_v59 }
 0x128   : > { %2693 = vmatpush1.bf16.msra.mxu0 %v4157_v60  ;;  %v4175_v60 = vld [vmem:[#allocation9 + $0x220] ss:$16 sps:$4 sm:$0xff]  }
 0x129   : > { %2857 = vmatpush1.bf16.msra.mxu1 %v4160_v61  ;;  %2694 = vmatprep.subr.bf16.mxu0 %v4165_v62  ;;  %v4178_v61 = vld [vmem:[#allocation9 + $0x228] ss:$16 sps:$4 sm:$0xff]  }
 0x12a   : > { %2858 = vmatprep.subr.bf16.mxu1 %v4168_v63  ;;  %v4183_v63 = vld [vmem:[#allocation9 + $0x244] ss:$16 sps:$4 sm:$0xff]  }
 0x12c   : > { %2695 = vmatpush1.bf16.msra.mxu0 %v4163_v1  ;;  %v4186_v1 = vld [vmem:[#allocation9 + $0x24c] ss:$16 sps:$4 sm:$0xff]  }
 0x12d   : > { %2859 = vmatpush1.bf16.msra.mxu1 %v4166_v3  ;;  %2705 = vmatprep.subr.bf16.mxu0 %v4171_v4 }
 0x12e   : > { %2869 = vmatprep.subr.bf16.mxu1 %v4174_v5  ;;  %v988_v5 = vsub.s32 2, %v5065_v7 }
 0x1a2   : > { %v819_v13 = vpop.f32.mrb[0].mxu0  ;;  %v5081_v24 = vpop.f32.mrb[0].mxu1 }
 0x1a3   : > { %v1018_v15 = vadd.f32 %v981_v11, %v819_v13  ;;  %v821_v16 = vpop.f32.mrb[1].mxu0  ;;  %v862_v26 = vpop.f32.mrb[1].mxu1  ;;  %v4181_v11 = vld [vmem:[#allocation9 + $0x240] ss:$16 sps:$4 sm:$0xff]   ;;  %v1000_v13 = vsub.s32 5, %v5065_v7 }
 0x1a4   : > { %v1019_v17 = vadd.f32 %v985_v12, %v821_v16  ;;  %v823_v18 = vpop.f32.mrb[2].mxu0  ;;  %v1021_v28 = vadd.f32 %v993_v22, %v862_v26  ;;  %v864_v29 = vpop.f32.mrb[2].mxu1  ;;  %v4184_v12 = vld [vmem:[#allocation9 + $0x248] ss:$16 sps:$4 sm:$0xff]   ;;  %v4189_v16 = vld [vmem:[#allocation9 + $0x264] ss:$16 sps:$4 sm:$0xff]  }
 0x1a5   : > { %v1026_v19 = vpack.c.bf16 %v1018_v15, %v1018_v15  ;;  %v824_v20 = vpop.f32.mrb[3].mxu0  ;;  %v865_v31 = vpop.f32.mrb[3].mxu1  ;;  %v1001_v22 = vrot.slane %v5068_v9, %v1000_v13  ;;  %v4193_v26 = vld [vmem:[#allocation9 + $0x280] ss:$16 sps:$4 sm:$0xff]   ;;  %v4201_v29 = vld [vmem:[#allocation9 + $0x2a4] ss:$16 sps:$4 sm:$0xff]  }
 0x1a6   : > { %v1027_v21 = vpack.c.bf16 %v1019_v17, %v1019_v17  ;;  %v1029_v33 = vpack.c.bf16 %v1021_v28, %v1021_v28  ;;  %v4192_v17 = vld [vmem:[#allocation9 + $0x26c] ss:$16 sps:$4 sm:$0xff]   ;;  %v4187_v20 = vld [vmem:[#allocation9 + $0x260] ss:$16 sps:$4 sm:$0xff]   ;;  %v4243_v13 = vld [vmem:[#allocation9 + $0x384] ss:$16 sps:$4 sm:$0xff]  }
 0x1a7   : > { %v1034_v23 = vmul.bf16 %v1026_v19, %v1026_v19 }
 0x1a8   : > { %v1035_v2 = vmul.bf16 %v1027_v21, %v1027_v21  ;;  %v1037_v36 = vmul.bf16 %v1029_v33, %v1029_v33 }
 0x1a9   : > { %v1042_v25 = vmul.bf16 %v1034_v23, %v1026_v19  ;;  %v4195_v23 = vld [vmem:[#allocation9 + $0x284] ss:$16 sps:$4 sm:$0xff]  }
 0x1aa   : > { %v1043_v27 = vmul.bf16 %v1035_v2, %v1027_v21  ;;  %v1045_v39 = vmul.bf16 %v1037_v36, %v1029_v33  ;;  %v4198_v2 = vld [vmem:[#allocation9 + $0x28c] ss:$16 sps:$4 sm:$0xff]  }
 0x1ab   : > { %v1050_v30 = vmul.bf16 1027030327, %v1042_v25 }
 0x1ac   : > { %v1051_v32 = vmul.bf16 1027030327, %v1043_v27  ;;  %v1053_v40 = vmul.bf16 1027030327, %v1045_v39  ;;  %v4196_v27 = vld [vmem:[#allocation9 + $0x288] ss:$16 sps:$4 sm:$0xff]  }
 0x1ad   : > { %v1058_v34 = vadd.bf16 %v1050_v30, %v1026_v19  ;;  %v4204_v30 = vld [vmem:[#allocation9 + $0x2ac] ss:$16 sps:$4 sm:$0xff]  }
 0x1ae   : > { %v1059_v35 = vadd.bf16 %v1051_v32, %v1027_v21  ;;  %v1061_v41 = vadd.bf16 %v1053_v40, %v1029_v33  ;;  %v4199_v32 = vld [vmem:[#allocation9 + $0x2a0] ss:$16 sps:$4 sm:$0xff]   ;;  %v4213_v40 = vld [vmem:[#allocation9 + $0x2e4] ss:$16 sps:$4 sm:$0xff]  }
 0x1af   : > { %v1066_v37 = vmul.bf16 1061961548, %v1058_v34 }
 0x1b0   : > { %v1067_v38 = vmul.bf16 1061961548, %v1059_v35  ;;  %v1069_v42 = vmul.bf16 1061961548, %v1061_v41  ;;  %v4210_v35 = vld [vmem:[#allocation9 + $0x2cc] ss:$16 sps:$4 sm:$0xff]  }
 0x1b1   : > { %4489 = vtanh.bf16 %v1066_v37  ;;  %v4205_v37 = vld [vmem:[#allocation9 + $0x2c0] ss:$16 sps:$4 sm:$0xff]   ;;  %v4216_v41 = vld [vmem:[#allocation9 + $0x2ec] ss:$16 sps:$4 sm:$0xff]  }
 0x1b2   : > { %4491 = vtanh.bf16 %v1067_v38  ;;  %v4208_v38 = vld [vmem:[#allocation9 + $0x2c8] ss:$16 sps:$4 sm:$0xff]  }
 0x1b3   : > { %4493 = vtanh.bf16 %v1069_v42 }
 0x1bc   : > { %v4490_v43 = vpop.eup %4489 }
 0x1bd   : > { %v4492_v0 = vpop.eup %4491  ;;  %v1082_v44 = vadd.bf16 1065369472, %v4490_v43  ;;  %v4211_v43 = vld [vmem:[#allocation9 + $0x2e0] ss:$16 sps:$4 sm:$0xff]  }
 0x1be   : > { %v1083_v45 = vadd.bf16 1065369472, %v4492_v0  ;;  %v4494_v52 = vpop.eup %4493  ;;  %v4214_v0 = vld [vmem:[#allocation9 + $0x2e8] ss:$16 sps:$4 sm:$0xff]  }
 0x1bf   : > { %v1090_v46 = vmul.bf16 1056980736, %v1082_v44  ;;  %v1085_v57 = vadd.bf16 1065369472, %v4494_v52  ;;  %v4225_v52 = vld [vmem:[#allocation9 + $0x324] ss:$16 sps:$4 sm:$0xff]  }
 0x1c0   : > { %v1091_v47 = vmul.bf16 1056980736, %v1083_v45  ;;  %v4219_v45 = vld [vmem:[#allocation9 + $0x304] ss:$16 sps:$4 sm:$0xff]  }
 0x1c1   : > { %v1098_v53 = vmul.bf16 %v1090_v46, %v1026_v19  ;;  %v1093_v62 = vmul.bf16 1056980736, %v1085_v57  ;;  %v989_v19 = vrot.slane %v5068_v9, %v988_v5  ;;  %v4222_v46 = vld [vmem:[#allocation9 + $0x30c] ss:$16 sps:$4 sm:$0xff]  }
 0x1c2   : > { %v1099_v48 = vmul.bf16 %v1091_v47, %v1027_v21  ;;  %v5083_v51 = vpop.f32.mrb[4].mxu0  ;;  %v4190_v21 = vld [vmem:[#allocation9 + $0x268] ss:$16 sps:$4 sm:$0xff]  }
 0x1c3   : > { %v903_v56 = vpop.f32.mrb[5].mxu0  ;;  %v1101_v3 = vmul.bf16 %v1093_v62, %v1029_v33  ;;  %v5085_v4 = vpop.f32.mrb[4].mxu1  ;;  %v1020_v25 = vadd.f32 %v989_v19, %v5081_v24  ;;  %v4202_v33 = vld [vmem:[#allocation9 + $0x2a8] ss:$16 sps:$4 sm:$0xff]   ;;  %v4207_v24 = vld [vmem:[#allocation9 + $0x2c4] ss:$16 sps:$4 sm:$0xff]  }
 0x1c4   : > { %2696 = vmatprep.mubr.bf16.mxu0 %v1099_v48  ;;  %2860 = vmatprep.mubr.bf16.mxu1 %v1099_v48  ;;  %v905_v58 = vpop.f32.mrb[6].mxu0  ;;  %v5088_v6 = vpop.f32.mrb[5].mxu1  ;;  %v1023_v28 = vadd.f32 %v1001_v22, %v903_v56  ;;  %v4217_v48 = vld [vmem:[#allocation9 + $0x300] ss:$16 sps:$4 sm:$0xff]   ;;  %v4226_v56 = vld [vmem:[#allocation9 + $0x328] ss:$16 sps:$4 sm:$0xff]  }
 0x1c5   : > { %2697 = vmatmul.mubr.bf16.vlgmr.msra.gmra.mrb[8].mxu0 %v1098_v53  ;;  %2861 = vmatmul.mubr.bf16.vlgmr.msra.gmra.mrb[8].mxu1 %v1098_v53  ;;  %v906_v59 = vpop.f32.mrb[7].mxu0  ;;  %v946_v15 = vpop.f32.mrb[6].mxu1  ;;  %v5096_v31 = vpack.c.bf16 %v1020_v25, %v1020_v25  ;;  %v4228_v53 = vld [vmem:[#allocation9 + $0x32c] ss:$16 sps:$4 sm:$0xff]   ;;  %v4231_v58 = vld [vmem:[#allocation9 + $0x344] ss:$16 sps:$4 sm:$0xff]  }
 0x1c6   : > { %2706 = vmatpush1.bf16.msra.mxu0 %v4169_v49  ;;  %2870 = vmatpush1.bf16.msra.mxu1 %v4172_v50  ;;  %v947_v18 = vpop.f32.mrb[7].mxu1  ;;  %v5098_v34 = vpack.c.bf16 %v1023_v28, %v1023_v28  ;;  %v4220_v49 = vld [vmem:[#allocation9 + $0x308] ss:$16 sps:$4 sm:$0xff]   ;;  %v4234_v59 = vld [vmem:[#allocation9 + $0x34c] ss:$16 sps:$4 sm:$0xff]  }
 0x1c7   : > { %2707 = vmatprep.subr.bf16.mxu0 %v4177_v54  ;;  %2871 = vmatprep.subr.bf16.mxu1 %v4180_v55  ;;  %v1036_v36 = vmul.bf16 %v5096_v31, %v5096_v31  ;;  %v4223_v55 = vld [vmem:[#allocation9 + $0x320] ss:$16 sps:$4 sm:$0xff]   ;;  %v4232_v62 = vld [vmem:[#allocation9 + $0x348] ss:$16 sps:$4 sm:$0xff]   ;;  %v4246_v15 = vld [vmem:[#allocation9 + $0x38c] ss:$16 sps:$4 sm:$0xff]  }
 0x1c8   : > { %2737 = vmatprep.mubr.bf16.mxu0 %v1101_v3  ;;  %2901 = vmatprep.mubr.bf16.mxu1 %v1101_v3  ;;  %v1039_v39 = vmul.bf16 %v5098_v34, %v5098_v34  ;;  %v4240_v3 = vld [vmem:[#allocation9 + $0x36c] ss:$16 sps:$4 sm:$0xff]   ;;  %v4249_v18 = vld [vmem:[#allocation9 + $0x3a4] ss:$16 sps:$4 sm:$0xff]  }
 0x1c9   : > { %v1044_v42 = vmul.bf16 %v1036_v36, %v5096_v31  ;;  %v4252_v19 = vld [vmem:[#allocation9 + $0x3ac] ss:$16 sps:$4 sm:$0xff]   ;;  %v4255_v22 = vld [vmem:[#allocation9 + $0x3c4] ss:$16 sps:$4 sm:$0xff]  }
 0x1ca   : > { %2708 = vmatpush1.bf16.msra.mxu0 %v4175_v60  ;;  %2872 = vmatpush1.bf16.msra.mxu1 %v4178_v61  ;;  %v1047_v44 = vmul.bf16 %v1039_v39, %v5098_v34  ;;  %v4229_v61 = vld [vmem:[#allocation9 + $0x340] ss:$16 sps:$4 sm:$0xff]   ;;  %v4261_v28 = vld [vmem:[#allocation9 + $0x3e4] ss:$16 sps:$4 sm:$0xff]  }
 0x1cb   : > { %2709 = vmatprep.subr.bf16.mxu0 %v4183_v63  ;;  %2873 = vmatprep.subr.bf16.mxu1 %v4186_v1  ;;  %v1052_v47 = vmul.bf16 1027030327, %v1044_v42  ;;  %v4237_v1 = vld [vmem:[#allocation9 + $0x364] ss:$16 sps:$4 sm:$0xff]   ;;  %v4265_v39 = vld [vmem:[#allocation9 + $0x400] ss:$16 sps:$4 sm:$0xff]  }
 0x1cc   : > { %v1055_v50 = vmul.bf16 1027030327, %v1047_v44  ;;  %v4267_v36 = vld [vmem:[#allocation9 + $0x404] ss:$16 sps:$4 sm:$0xff]   ;;  %v4271_v44 = vld [vmem:[#allocation9 + $0x420] ss:$16 sps:$4 sm:$0xff]  }
 0x1cd   : > { %v1060_v54 = vadd.bf16 %v1052_v47, %v5096_v31  ;;  %v4273_v42 = vld [vmem:[#allocation9 + $0x424] ss:$16 sps:$4 sm:$0xff]   ;;  %v4282_v47 = vld [vmem:[#allocation9 + $0x44c] ss:$16 sps:$4 sm:$0xff]  }
 0x1ce   : > { %2710 = vmatpush1.bf16.msra.mxu0 %v4181_v11  ;;  %2874 = vmatpush1.bf16.msra.mxu1 %v4184_v12  ;;  %v1063_v57 = vadd.bf16 %v1055_v50, %v5098_v34  ;;  %v4235_v11 = vld [vmem:[#allocation9 + $0x360] ss:$16 sps:$4 sm:$0xff]   ;;  %v4238_v12 = vld [vmem:[#allocation9 + $0x368] ss:$16 sps:$4 sm:$0xff]   ;;  %v4285_v50 = vld [vmem:[#allocation9 + $0x464] ss:$16 sps:$4 sm:$0xff]  }
 0x1cf   : > { %2711 = vmatprep.subr.bf16.mxu0 %v4189_v16  ;;  %2875 = vmatprep.subr.bf16.mxu1 %v4192_v17  ;;  %v1068_v60 = vmul.bf16 1061961548, %v1060_v54  ;;  %v4241_v16 = vld [vmem:[#allocation9 + $0x380] ss:$16 sps:$4 sm:$0xff]   ;;  %v4244_v17 = vld [vmem:[#allocation9 + $0x388] ss:$16 sps:$4 sm:$0xff]  }
 0x1d0   : > { %v1071_v63 = vmul.bf16 1061961548, %v1063_v57  ;;  %v4283_v54 = vld [vmem:[#allocation9 + $0x460] ss:$16 sps:$4 sm:$0xff]   ;;  %v4291_v57 = vld [vmem:[#allocation9 + $0x484] ss:$16 sps:$4 sm:$0xff]  }
 0x1d1   : > { %4495 = vtanh.bf16 %v1068_v60  ;;  %v4289_v60 = vld [vmem:[#allocation9 + $0x480] ss:$16 sps:$4 sm:$0xff]  }
 0x1d2   : > { %2712 = vmatpush1.bf16.msra.mxu0 %v4187_v20  ;;  %2876 = vmatpush1.bf16.msra.mxu1 %v4190_v21  ;;  %4497 = vtanh.bf16 %v1071_v63  ;;  %v4247_v20 = vld [vmem:[#allocation9 + $0x3a0] ss:$16 sps:$4 sm:$0xff]   ;;  %v4250_v21 = vld [vmem:[#allocation9 + $0x3a8] ss:$16 sps:$4 sm:$0xff]   ;;  %v4297_v63 = vld [vmem:[#allocation9 + $0x4a4] ss:$16 sps:$4 sm:$0xff]  }
 0x1d3   : > { %2713 = vmatprep.subr.bf16.mxu0 %v4195_v23  ;;  %2877 = vmatprep.subr.bf16.mxu1 %v4198_v2  ;;  %v4258_v23 = vld [vmem:[#allocation9 + $0x3cc] ss:$16 sps:$4 sm:$0xff]  }
 0x1d6   : > { %2714 = vmatpush1.bf16.msra.mxu0 %v4193_v26  ;;  %2878 = vmatpush1.bf16.msra.mxu1 %v4196_v27  ;;  %v4253_v26 = vld [vmem:[#allocation9 + $0x3c0] ss:$16 sps:$4 sm:$0xff]   ;;  %v4256_v27 = vld [vmem:[#allocation9 + $0x3c8] ss:$16 sps:$4 sm:$0xff]  }
 0x1d7   : > { %2715 = vmatprep.subr.bf16.mxu0 %v4201_v29  ;;  %2879 = vmatprep.subr.bf16.mxu1 %v4204_v30  ;;  %v4264_v29 = vld [vmem:[#allocation9 + $0x3ec] ss:$16 sps:$4 sm:$0xff]  }
 0x1da   : > { %2716 = vmatpush1.bf16.msra.mxu0 %v4199_v32  ;;  %2880 = vmatpush1.bf16.msra.mxu1 %v4202_v33  ;;  %v4259_v33 = vld [vmem:[#allocation9 + $0x3e0] ss:$16 sps:$4 sm:$0xff]  }
 0x1db   : > { %2717 = vmatprep.subr.bf16.mxu0 %v4207_v24  ;;  %2881 = vmatprep.subr.bf16.mxu1 %v4210_v35  ;;  %v4262_v24 = vld [vmem:[#allocation9 + $0x3e8] ss:$16 sps:$4 sm:$0xff]  }
 0x1dc   : > { %v4496_v2 = vpop.eup %4495 }
 0x1dd   : > { %v4498_v25 = vpop.eup %4497  ;;  %v1084_v30 = vadd.bf16 1065369472, %v4496_v2 }
 0x1de   : > { %2718 = vmatpush1.bf16.msra.mxu0 %v4205_v37  ;;  %2882 = vmatpush1.bf16.msra.mxu1 %v4208_v38  ;;  %v1087_v32 = vadd.bf16 1065369472, %v4498_v25  ;;  %v4270_v37 = vld [vmem:[#allocation9 + $0x40c] ss:$16 sps:$4 sm:$0xff]   ;;  %v4315_v25 = vld [vmem:[#allocation9 + $0x504] ss:$16 sps:$4 sm:$0xff]  }
 0x1df   : > { %2719 = vmatprep.subr.bf16.mxu0 %v4213_v40  ;;  %2883 = vmatprep.subr.bf16.mxu1 %v4216_v41  ;;  %v1092_v35 = vmul.bf16 1056980736, %v1084_v30  ;;  %v4268_v40 = vld [vmem:[#allocation9 + $0x408] ss:$16 sps:$4 sm:$0xff]  }
 0x1e0   : > { %v1095_v38 = vmul.bf16 1056980736, %v1087_v32  ;;  %v4321_v32 = vld [vmem:[#allocation9 + $0x524] ss:$16 sps:$4 sm:$0xff]  }
 0x1e1   : > { %v1100_v41 = vmul.bf16 %v1092_v35, %v5096_v31  ;;  %v996_v31 = vsub.s32 4, %v5065_v7  ;;  %v4319_v35 = vld [vmem:[#allocation9 + $0x520] ss:$16 sps:$4 sm:$0xff]  }
 0x1e2   : > { %2720 = vmatpush1.bf16.msra.mxu0 %v4211_v43  ;;  %2884 = vmatpush1.bf16.msra.mxu1 %v4214_v0  ;;  %v4276_v43 = vld [vmem:[#allocation9 + $0x42c] ss:$16 sps:$4 sm:$0xff]   ;;  %v1103_v0 = vmul.bf16 %v1095_v38, %v5098_v34  ;;  %v1008_v34 = vsub.s32 7, %v5065_v7  ;;  %v4327_v38 = vld [vmem:[#allocation9 + $0x544] ss:$16 sps:$4 sm:$0xff]  }
 0x1e3   : > { %2721 = vmatprep.subr.bf16.mxu0 %v4219_v45  ;;  %2885 = vmatprep.subr.bf16.mxu1 %v4222_v46  ;;  %v4274_v45 = vld [vmem:[#allocation9 + $0x428] ss:$16 sps:$4 sm:$0xff]   ;;  %v4279_v46 = vld [vmem:[#allocation9 + $0x444] ss:$16 sps:$4 sm:$0xff]  }
 0x1e6   : > { %2722 = vmatpush1.bf16.msra.mxu0 %v4217_v48  ;;  %2886 = vmatpush1.bf16.msra.mxu1 %v4220_v49  ;;  %v4277_v48 = vld [vmem:[#allocation9 + $0x440] ss:$16 sps:$4 sm:$0xff]   ;;  %v4280_v49 = vld [vmem:[#allocation9 + $0x448] ss:$16 sps:$4 sm:$0xff]  }
 0x1e7   : > { %2723 = vmatprep.subr.bf16.mxu0 %v4225_v52  ;;  %2887 = vmatprep.subr.bf16.mxu1 %v4228_v53  ;;  %v4288_v52 = vld [vmem:[#allocation9 + $0x46c] ss:$16 sps:$4 sm:$0xff]   ;;  %v997_v53 = vrot.slane %v5068_v9, %v996_v31 }
 0x1e8   : > { %v4342_v31 = vld [vmem:[#allocation9 + $0x58c] ss:$16 sps:$4 sm:$0xff]  }
 0x1ea   : > { %2724 = vmatpush1.bf16.msra.mxu0 %v4223_v55  ;;  %2888 = vmatpush1.bf16.msra.mxu1 %v4226_v56  ;;  %v4286_v55 = vld [vmem:[#allocation9 + $0x468] ss:$16 sps:$4 sm:$0xff]   ;;  %v1009_v56 = vrot.slane %v5068_v9, %v1008_v34  ;;  %v4345_v34 = vld [vmem:[#allocation9 + $0x5a4] ss:$16 sps:$4 sm:$0xff]  }
 0x1eb   : > { %2725 = vmatprep.subr.bf16.mxu0 %v4231_v58  ;;  %2889 = vmatprep.subr.bf16.mxu1 %v4234_v59  ;;  %v4294_v58 = vld [vmem:[#allocation9 + $0x48c] ss:$16 sps:$4 sm:$0xff]   ;;  %v1022_v59 = vadd.f32 %v997_v53, %v5083_v51  ;;  %v4303_v51 = vld [vmem:[#allocation9 + $0x4c4] ss:$16 sps:$4 sm:$0xff]   ;;  %v4346_v53 = vld [vmem:[#allocation9 + $0x5a8] ss:$16 sps:$4 sm:$0xff]  }
 0x1ee   : > { %2726 = vmatpush1.bf16.msra.mxu0 %v4229_v61  ;;  %2890 = vmatpush1.bf16.msra.mxu1 %v4232_v62  ;;  %v4292_v61 = vld [vmem:[#allocation9 + $0x488] ss:$16 sps:$4 sm:$0xff]   ;;  %v1025_v62 = vadd.f32 %v1009_v56, %v5088_v6  ;;  %v4301_v6 = vld [vmem:[#allocation9 + $0x4c0] ss:$16 sps:$4 sm:$0xff]  }
 0x1ef   : > { %2727 = vmatprep.subr.bf16.mxu0 %v4237_v1  ;;  %2891 = vmatprep.subr.bf16.mxu1 %v4240_v3  ;;  %v4300_v1 = vld [vmem:[#allocation9 + $0x4ac] ss:$16 sps:$4 sm:$0xff]   ;;  %v5116_v3 = vpack.c.bf16 %v1022_v59, %v1022_v59  ;;  %v4352_v59 = vld [vmem:[#allocation9 + $0x5c8] ss:$16 sps:$4 sm:$0xff]  }
 0x1f2   : > { %2728 = vmatpush1.bf16.msra.mxu0 %v4235_v11  ;;  %2892 = vmatpush1.bf16.msra.mxu1 %v4238_v12  ;;  %v4295_v11 = vld [vmem:[#allocation9 + $0x4a0] ss:$16 sps:$4 sm:$0xff]   ;;  %v4298_v12 = vld [vmem:[#allocation9 + $0x4a8] ss:$16 sps:$4 sm:$0xff]  }
 0x1f3   : > { %2729 = vmatprep.subr.bf16.mxu0 %v4243_v13  ;;  %2893 = vmatprep.subr.bf16.mxu1 %v4246_v15  ;;  %v5118_v13 = vpack.c.bf16 %v1025_v62, %v1025_v62  ;;  %v4306_v15 = vld [vmem:[#allocation9 + $0x4cc] ss:$16 sps:$4 sm:$0xff]  }
 0x1f6   : > { %2730 = vmatpush1.bf16.msra.mxu0 %v4241_v16  ;;  %2894 = vmatpush1.bf16.msra.mxu1 %v4244_v17  ;;  %v1038_v16 = vmul.bf16 %v5116_v3, %v5116_v3  ;;  %v4304_v17 = vld [vmem:[#allocation9 + $0x4c8] ss:$16 sps:$4 sm:$0xff]  }
 0x1f7   : > { %2731 = vmatprep.subr.bf16.mxu0 %v4249_v18  ;;  %2895 = vmatprep.subr.bf16.mxu1 %v4252_v19  ;;  %v1041_v18 = vmul.bf16 %v5118_v13, %v5118_v13  ;;  %v4309_v19 = vld [vmem:[#allocation9 + $0x4e4] ss:$16 sps:$4 sm:$0xff]  }
 0x1f9   : > { %v1049_v2 = vmul.bf16 %v1041_v18, %v5118_v13 }
 0x1fa   : > { %2732 = vmatpush1.bf16.msra.mxu0 %v4247_v20  ;;  %2896 = vmatpush1.bf16.msra.mxu1 %v4250_v21  ;;  %v4312_v20 = vld [vmem:[#allocation9 + $0x4ec] ss:$16 sps:$4 sm:$0xff]   ;;  %v1046_v21 = vmul.bf16 %v1038_v16, %v5116_v3 }
 0x1fb   : > { %2733 = vmatprep.subr.bf16.mxu0 %v4255_v22  ;;  %2897 = vmatprep.subr.bf16.mxu1 %v4258_v23  ;;  %v4307_v22 = vld [vmem:[#allocation9 + $0x4e0] ss:$16 sps:$4 sm:$0xff]   ;;  %v4310_v23 = vld [vmem:[#allocation9 + $0x4e8] ss:$16 sps:$4 sm:$0xff]   ;;  %v1057_v30 = vmul.bf16 1027030327, %v1049_v2 }
 0x1fc   : > { %v4375_v2 = vld [vmem:[#allocation9 + $0x644] ss:$16 sps:$4 sm:$0xff]  }
 0x1fe   : > { %2734 = vmatpush1.bf16.msra.mxu0 %v4253_v26  ;;  %2898 = vmatpush1.bf16.msra.mxu1 %v4256_v27  ;;  %v4318_v26 = vld [vmem:[#allocation9 + $0x50c] ss:$16 sps:$4 sm:$0xff]   ;;  %v1054_v27 = vmul.bf16 1027030327, %v1046_v21 }
 0x1ff   : > { %2735 = vmatprep.subr.bf16.mxu0 %v4261_v28  ;;  %2899 = vmatprep.subr.bf16.mxu1 %v4264_v29  ;;  %v4313_v28 = vld [vmem:[#allocation9 + $0x500] ss:$16 sps:$4 sm:$0xff]   ;;  %v4316_v29 = vld [vmem:[#allocation9 + $0x508] ss:$16 sps:$4 sm:$0xff]  }
 0x202   : > { %2736 = vmatpush1.bf16.msra.mxu0 %v4259_v33  ;;  %2900 = vmatpush1.bf16.msra.mxu1 %v4262_v24  ;;  %v4324_v33 = vld [vmem:[#allocation9 + $0x52c] ss:$16 sps:$4 sm:$0xff]   ;;  %v1062_v24 = vadd.bf16 %v1054_v27, %v5116_v3  ;;  %v4376_v27 = vld [vmem:[#allocation9 + $0x648] ss:$16 sps:$4 sm:$0xff]  }
 0x203   : > { %2746 = vmatprep.subr.bf16.mxu0 %v4267_v36  ;;  %2910 = vmatprep.subr.bf16.mxu1 %v4270_v37  ;;  %v4322_v36 = vld [vmem:[#allocation9 + $0x528] ss:$16 sps:$4 sm:$0xff]   ;;  %v1065_v37 = vadd.bf16 %v1057_v30, %v5118_v13  ;;  %v4379_v30 = vld [vmem:[#allocation9 + $0x660] ss:$16 sps:$4 sm:$0xff]  }
 0x205   : > { %2738 = vmatmul.mubr.bf16.vlgmr.msra.gmra.mrb[8].mxu0 %v1100_v41  ;;  %2902 = vmatmul.mubr.bf16.vlgmr.msra.gmra.mrb[8].mxu1 %v1100_v41  ;;  %v4325_v41 = vld [vmem:[#allocation9 + $0x540] ss:$16 sps:$4 sm:$0xff]  }
 0x206   : > { %2747 = vmatpush1.bf16.msra.mxu0 %v4265_v39  ;;  %2911 = vmatpush1.bf16.msra.mxu1 %v4268_v40  ;;  %v4330_v39 = vld [vmem:[#allocation9 + $0x54c] ss:$16 sps:$4 sm:$0xff]   ;;  %v1070_v40 = vmul.bf16 1061961548, %v1062_v24 }
 0x207   : > { %2748 = vmatprep.subr.bf16.mxu0 %v4273_v42  ;;  %2912 = vmatprep.subr.bf16.mxu1 %v4276_v43  ;;  %v4328_v42 = vld [vmem:[#allocation9 + $0x548] ss:$16 sps:$4 sm:$0xff]   ;;  %v1073_v43 = vmul.bf16 1061961548, %v1065_v37  ;;  %v4390_v24 = vld [vmem:[#allocation9 + $0x68c] ss:$16 sps:$4 sm:$0xff]  }
 0x208   : > { %2778 = vmatprep.mubr.bf16.mxu0 %v1103_v0  ;;  %2942 = vmatprep.mubr.bf16.mxu1 %v1103_v0  ;;  %v4333_v0 = vld [vmem:[#allocation9 + $0x564] ss:$16 sps:$4 sm:$0xff]   ;;  %4499 = vtanh.bf16 %v1070_v40  ;;  %v4388_v37 = vld [vmem:[#allocation9 + $0x688] ss:$16 sps:$4 sm:$0xff]  }
 0x209   : > { %4501 = vtanh.bf16 %v1073_v43  ;;  %v4402_v43 = vld [vmem:[#allocation9 + $0x6cc] ss:$16 sps:$4 sm:$0xff]  }
 0x20a   : > { %2749 = vmatpush1.bf16.msra.mxu0 %v4271_v44  ;;  %2913 = vmatpush1.bf16.msra.mxu1 %v4274_v45  ;;  %v4336_v44 = vld [vmem:[#allocation9 + $0x56c] ss:$16 sps:$4 sm:$0xff]   ;;  %v4331_v45 = vld [vmem:[#allocation9 + $0x560] ss:$16 sps:$4 sm:$0xff]  }
 0x20b   : > { %2750 = vmatprep.subr.bf16.mxu0 %v4279_v46  ;;  %2914 = vmatprep.subr.bf16.mxu1 %v4282_v47  ;;  %v4334_v46 = vld [vmem:[#allocation9 + $0x568] ss:$16 sps:$4 sm:$0xff]   ;;  %v4339_v47 = vld [vmem:[#allocation9 + $0x584] ss:$16 sps:$4 sm:$0xff]  }
 0x20e   : > { %2751 = vmatpush1.bf16.msra.mxu0 %v4277_v48  ;;  %2915 = vmatpush1.bf16.msra.mxu1 %v4280_v49  ;;  %v4337_v48 = vld [vmem:[#allocation9 + $0x580] ss:$16 sps:$4 sm:$0xff]   ;;  %v4340_v49 = vld [vmem:[#allocation9 + $0x588] ss:$16 sps:$4 sm:$0xff]  }
 0x20f   : > { %2752 = vmatprep.subr.bf16.mxu0 %v4285_v50  ;;  %2916 = vmatprep.subr.bf16.mxu1 %v4288_v52  ;;  %v4348_v50 = vld [vmem:[#allocation9 + $0x5ac] ss:$16 sps:$4 sm:$0xff]   ;;  %v4343_v52 = vld [vmem:[#allocation9 + $0x5a0] ss:$16 sps:$4 sm:$0xff]  }
 0x212   : > { %2753 = vmatpush1.bf16.msra.mxu0 %v4283_v54  ;;  %2917 = vmatpush1.bf16.msra.mxu1 %v4286_v55  ;;  %v4351_v54 = vld [vmem:[#allocation9 + $0x5c4] ss:$16 sps:$4 sm:$0xff]   ;;  %v4354_v55 = vld [vmem:[#allocation9 + $0x5cc] ss:$16 sps:$4 sm:$0xff]  }
 0x213   : > { %2754 = vmatprep.subr.bf16.mxu0 %v4291_v57  ;;  %2918 = vmatprep.subr.bf16.mxu1 %v4294_v58  ;;  %v4500_v56 = vpop.eup %4499  ;;  %v4349_v58 = vld [vmem:[#allocation9 + $0x5c0] ss:$16 sps:$4 sm:$0xff]  }
 0x214   : > { %v4502_v57 = vpop.eup %4501  ;;  %v1086_v62 = vadd.bf16 1065369472, %v4500_v56 }
 0x216   : > { %2755 = vmatpush1.bf16.msra.mxu0 %v4289_v60  ;;  %2919 = vmatpush1.bf16.msra.mxu1 %v4292_v61  ;;  %v4357_v60 = vld [vmem:[#allocation9 + $0x5e4] ss:$16 sps:$4 sm:$0xff]   ;;  %v4360_v61 = vld [vmem:[#allocation9 + $0x5ec] ss:$16 sps:$4 sm:$0xff]  }
 0x217   : > { %2756 = vmatprep.subr.bf16.mxu0 %v4297_v63  ;;  %2920 = vmatprep.subr.bf16.mxu1 %v4300_v1  ;;  %v1089_v63 = vadd.bf16 1065369472, %v4502_v57  ;;  %v4355_v1 = vld [vmem:[#allocation9 + $0x5e0] ss:$16 sps:$4 sm:$0xff]  }
 0x218   : > { %v4415_v57 = vld [vmem:[#allocation9 + $0x720] ss:$16 sps:$4 sm:$0xff]  }
 0x219   : > { %v1097_v16 = vmul.bf16 1056980736, %v1089_v63  ;;  %v4424_v63 = vld [vmem:[#allocation9 + $0x748] ss:$16 sps:$4 sm:$0xff]  }
 0x21a   : > { %2757 = vmatpush1.bf16.msra.mxu0 %v4295_v11  ;;  %2921 = vmatpush1.bf16.msra.mxu1 %v4298_v12  ;;  %v4358_v11 = vld [vmem:[#allocation9 + $0x5e8] ss:$16 sps:$4 sm:$0xff]   ;;  %v1094_v12 = vmul.bf16 1056980736, %v1086_v62  ;;  %v4421_v62 = vld [vmem:[#allocation9 + $0x740] ss:$16 sps:$4 sm:$0xff]  }
 0x21b   : > { %2758 = vmatprep.subr.bf16.mxu0 %v4303_v51  ;;  %2922 = vmatprep.subr.bf16.mxu1 %v4306_v15  ;;  %v4363_v51 = vld [vmem:[#allocation9 + $0x604] ss:$16 sps:$4 sm:$0xff]   ;;  %v4366_v15 = vld [vmem:[#allocation9 + $0x60c] ss:$16 sps:$4 sm:$0xff]   ;;  %v1105_v21 = vmul.bf16 %v1097_v16, %v5118_v13 }
 0x21c   : > { %v1102_v18 = vmul.bf16 %v1094_v12, %v5116_v3  ;;  %v1004_v3 = vsub.s32 6, %v5065_v7  ;;  %v4381_v13 = vld [vmem:[#allocation9 + $0x664] ss:$16 sps:$4 sm:$0xff]   ;;  %v4427_v12 = vld [vmem:[#allocation9 + $0x760] ss:$16 sps:$4 sm:$0xff]  }
 0x21d   : > { %v4438_v16 = vld [vmem:[#allocation9 + $0x78c] ss:$16 sps:$4 sm:$0xff]  }
 0x21e   : > { %2759 = vmatpush1.bf16.msra.mxu0 %v4301_v6  ;;  %2923 = vmatpush1.bf16.msra.mxu1 %v4304_v17  ;;  %v4361_v6 = vld [vmem:[#allocation9 + $0x600] ss:$16 sps:$4 sm:$0xff]   ;;  %v4364_v17 = vld [vmem:[#allocation9 + $0x608] ss:$16 sps:$4 sm:$0xff]  }
 0x21f   : > { %2760 = vmatprep.subr.bf16.mxu0 %v4309_v19  ;;  %2924 = vmatprep.subr.bf16.mxu1 %v4312_v20  ;;  %v4369_v19 = vld [vmem:[#allocation9 + $0x624] ss:$16 sps:$4 sm:$0xff]   ;;  %v4372_v20 = vld [vmem:[#allocation9 + $0x62c] ss:$16 sps:$4 sm:$0xff]  }
 0x222   : > { %2761 = vmatpush1.bf16.msra.mxu0 %v4307_v22  ;;  %2925 = vmatpush1.bf16.msra.mxu1 %v4310_v23  ;;  %v4367_v22 = vld [vmem:[#allocation9 + $0x620] ss:$16 sps:$4 sm:$0xff]   ;;  %v4370_v23 = vld [vmem:[#allocation9 + $0x628] ss:$16 sps:$4 sm:$0xff]  }
 0x223   : > { %2762 = vmatprep.subr.bf16.mxu0 %v4315_v25  ;;  %2926 = vmatprep.subr.bf16.mxu1 %v4318_v26  ;;  %v4378_v25 = vld [vmem:[#allocation9 + $0x64c] ss:$16 sps:$4 sm:$0xff]   ;;  %v4373_v26 = vld [vmem:[#allocation9 + $0x640] ss:$16 sps:$4 sm:$0xff]  }
 0x226   : > { %2763 = vmatpush1.bf16.msra.mxu0 %v4313_v28  ;;  %2927 = vmatpush1.bf16.msra.mxu1 %v4316_v29  ;;  %v4384_v28 = vld [vmem:[#allocation9 + $0x66c] ss:$16 sps:$4 sm:$0xff]   ;;  %v1005_v29 = vrot.slane %v5068_v9, %v1004_v3  ;;  %v4391_v9 = vld [vmem:[#allocation9 + $0x6a0] ss:$16 sps:$4 sm:$0xff]   ;;  %v4448_v3 = vld [vmem:[#allocation9 + $0x7c8] ss:$16 sps:$4 sm:$0xff]  }
 0x227   : > { %2764 = vmatprep.subr.bf16.mxu0 %v4321_v32  ;;  %2928 = vmatprep.subr.bf16.mxu1 %v4324_v33  ;;  %v4382_v32 = vld [vmem:[#allocation9 + $0x668] ss:$16 sps:$4 sm:$0xff]   ;;  %v4387_v33 = vld [vmem:[#allocation9 + $0x684] ss:$16 sps:$4 sm:$0xff]  }
 0x22a   : > { %2765 = vmatpush1.bf16.msra.mxu0 %v4319_v35  ;;  %2929 = vmatpush1.bf16.msra.mxu1 %v4322_v36  ;;  %v1024_v35 = vadd.f32 %v1005_v29, %v5085_v4  ;;  %v4385_v36 = vld [vmem:[#allocation9 + $0x680] ss:$16 sps:$4 sm:$0xff]   ;;  %v4454_v29 = vld [vmem:[#allocation9 + $0x7e8] ss:$16 sps:$4 sm:$0xff]  }
 0x22b   : > { %2766 = vmatprep.subr.bf16.mxu0 %v4327_v38  ;;  %2930 = vmatprep.subr.bf16.mxu1 %v4330_v39  ;;  %v4393_v38 = vld [vmem:[#allocation9 + $0x6a4] ss:$16 sps:$4 sm:$0xff]   ;;  %v4396_v39 = vld [vmem:[#allocation9 + $0x6ac] ss:$16 sps:$4 sm:$0xff]  }
 0x22c   : > { %v5133_v40 = vpack.c.bf16 %v1024_v35, %v1024_v35  ;;  %v4459_v35 = vld [vmem:[#allocation11] sm:$0xff]  }
 0x22e   : > { %2767 = vmatpush1.bf16.msra.mxu0 %v4325_v41  ;;  %2931 = vmatpush1.bf16.msra.mxu1 %v4328_v42  ;;  %v4394_v41 = vld [vmem:[#allocation9 + $0x6a8] ss:$16 sps:$4 sm:$0xff]   ;;  %v4399_v42 = vld [vmem:[#allocation9 + $0x6c4] ss:$16 sps:$4 sm:$0xff]   ;;  %v1040_v4 = vmul.bf16 %v5133_v40, %v5133_v40 }
 0x22f   : > { %2768 = vmatprep.subr.bf16.mxu0 %v4333_v0  ;;  %2932 = vmatprep.subr.bf16.mxu1 %v4336_v44  ;;  %v4397_v0 = vld [vmem:[#allocation9 + $0x6c0] ss:$16 sps:$4 sm:$0xff]   ;;  %v4400_v44 = vld [vmem:[#allocation9 + $0x6c8] ss:$16 sps:$4 sm:$0xff]  }
 0x232   : > { %2769 = vmatpush1.bf16.msra.mxu0 %v4331_v45  ;;  %2933 = vmatpush1.bf16.msra.mxu1 %v4334_v46  ;;  %v4405_v45 = vld [vmem:[#allocation9 + $0x6e4] ss:$16 sps:$4 sm:$0xff]   ;;  %v4408_v46 = vld [vmem:[#allocation9 + $0x6ec] ss:$16 sps:$4 sm:$0xff]  }
 0x233   : > { %2770 = vmatprep.subr.bf16.mxu0 %v4339_v47  ;;  %2934 = vmatprep.subr.bf16.mxu1 %v4342_v31  ;;  %v1048_v47 = vmul.bf16 %v1040_v4, %v5133_v40  ;;  %v4403_v31 = vld [vmem:[#allocation9 + $0x6e0] ss:$16 sps:$4 sm:$0xff]   ;;  %v4469_v4 = vld [vmem:[#allocation11 + $0x58] sm:$0xff]  }
 0x236   : > { %2771 = vmatpush1.bf16.msra.mxu0 %v4337_v48  ;;  %2935 = vmatpush1.bf16.msra.mxu1 %v4340_v49  ;;  %v4406_v48 = vld [vmem:[#allocation9 + $0x6e8] ss:$16 sps:$4 sm:$0xff]   ;;  %v4411_v49 = vld [vmem:[#allocation9 + $0x704] ss:$16 sps:$4 sm:$0xff]  }
 0x237   : > { %2772 = vmatprep.subr.bf16.mxu0 %v4345_v34  ;;  %2936 = vmatprep.subr.bf16.mxu1 %v4348_v50  ;;  %v4414_v34 = vld [vmem:[#allocation9 + $0x70c] ss:$16 sps:$4 sm:$0xff]   ;;  %v1056_v50 = vmul.bf16 1027030327, %v1048_v47  ;;  %v4474_v47 = vld [vmem:[#allocation11 + $0xe0] sm:$0xff]  }
 0x239   : > { %v1064_v56 = vadd.bf16 %v1056_v50, %v5133_v40  ;;  %v4479_v50 = vld [vmem:[#allocation11 + $0x28] sm:$0xff]  }
 0x23a   : > { %2773 = vmatpush1.bf16.msra.mxu0 %v4343_v52  ;;  %2937 = vmatpush1.bf16.msra.mxu1 %v4346_v53  ;;  %v4409_v52 = vld [vmem:[#allocation9 + $0x700] ss:$16 sps:$4 sm:$0xff]   ;;  %v4412_v53 = vld [vmem:[#allocation9 + $0x708] ss:$16 sps:$4 sm:$0xff]  }
 0x23b   : > { %2774 = vmatprep.subr.bf16.mxu0 %v4351_v54  ;;  %2938 = vmatprep.subr.bf16.mxu1 %v4354_v55  ;;  %v4417_v54 = vld [vmem:[#allocation9 + $0x724] ss:$16 sps:$4 sm:$0xff]   ;;  %v4420_v55 = vld [vmem:[#allocation9 + $0x72c] ss:$16 sps:$4 sm:$0xff]  }
 0x23e   : > { %2775 = vmatpush1.bf16.msra.mxu0 %v4349_v58  ;;  %2939 = vmatpush1.bf16.msra.mxu1 %v4352_v59  ;;  %v4418_v58 = vld [vmem:[#allocation9 + $0x728] ss:$16 sps:$4 sm:$0xff]   ;;  %v4423_v59 = vld [vmem:[#allocation9 + $0x744] ss:$16 sps:$4 sm:$0xff]  }
 0x23f   : > { %2776 = vmatprep.subr.bf16.mxu0 %v4357_v60  ;;  %2940 = vmatprep.subr.bf16.mxu1 %v4360_v61  ;;  %v4426_v60 = vld [vmem:[#allocation9 + $0x74c] ss:$16 sps:$4 sm:$0xff]   ;;  %v1072_v61 = vmul.bf16 1061961548, %v1064_v56  ;;  %v4484_v56 = vld [vmem:[#allocation11 + $0xb0] sm:$0xff]  }
 0x241   : > { %4503 = vtanh.bf16 %v1072_v61  ;;  %v1362_v61 = vld [vmem:[%s5213_s4] sm:$0xf] }
 0x242   : > { %2777 = vmatpush1.bf16.msra.mxu0 %v4355_v1  ;;  %2941 = vmatpush1.bf16.msra.mxu1 %v4358_v11  ;;  %v4429_v1 = vld [vmem:[#allocation9 + $0x764] ss:$16 sps:$4 sm:$0xff]   ;;  %v4432_v11 = vld [vmem:[#allocation9 + $0x76c] ss:$16 sps:$4 sm:$0xff]  }
 0x243   : > { %2787 = vmatprep.subr.bf16.mxu0 %v4363_v51  ;;  %2951 = vmatprep.subr.bf16.mxu1 %v4366_v15  ;;  %v4430_v51 = vld [vmem:[#allocation9 + $0x768] ss:$16 sps:$4 sm:$0xff]   ;;  %v4435_v15 = vld [vmem:[#allocation9 + $0x784] ss:$16 sps:$4 sm:$0xff]  }
 0x245   : > { %2779 = vmatmul.mubr.bf16.vlgmr.msra.gmra.mrb[8].mxu0 %v1102_v18  ;;  %2943 = vmatmul.mubr.bf16.vlgmr.msra.gmra.mrb[8].mxu1 %v1102_v18  ;;  %v4441_v18 = vld [vmem:[#allocation9 + $0x7a4] ss:$16 sps:$4 sm:$0xff]  }
 0x246   : > { %2788 = vmatpush1.bf16.msra.mxu0 %v4361_v6  ;;  %2952 = vmatpush1.bf16.msra.mxu1 %v4364_v17  ;;  %v4433_v6 = vld [vmem:[#allocation9 + $0x780] ss:$16 sps:$4 sm:$0xff]   ;;  %v4436_v17 = vld [vmem:[#allocation9 + $0x788] ss:$16 sps:$4 sm:$0xff]  }
 0x247   : > { %2789 = vmatprep.subr.bf16.mxu0 %v4369_v19  ;;  %2953 = vmatprep.subr.bf16.mxu1 %v4372_v20  ;;  %v4444_v19 = vld [vmem:[#allocation9 + $0x7ac] ss:$16 sps:$4 sm:$0xff]   ;;  %v4439_v20 = vld [vmem:[#allocation9 + $0x7a0] ss:$16 sps:$4 sm:$0xff]  }
 0x248   : > { %2819 = vmatprep.mubr.bf16.mxu0 %v1105_v21  ;;  %2983 = vmatprep.mubr.bf16.mxu1 %v1105_v21  ;;  %v4442_v21 = vld [vmem:[#allocation9 + $0x7a8] ss:$16 sps:$4 sm:$0xff]  }
 0x24a   : > { %2790 = vmatpush1.bf16.msra.mxu0 %v4367_v22  ;;  %2954 = vmatpush1.bf16.msra.mxu1 %v4370_v23  ;;  %v4447_v22 = vld [vmem:[#allocation9 + $0x7c4] ss:$16 sps:$4 sm:$0xff]   ;;  %v4450_v23 = vld [vmem:[#allocation9 + $0x7cc] ss:$16 sps:$4 sm:$0xff]  }
 0x24b   : > { %2791 = vmatprep.subr.bf16.mxu0 %v4375_v2  ;;  %2955 = vmatprep.subr.bf16.mxu1 %v4378_v25  ;;  %v4445_v25 = vld [vmem:[#allocation9 + $0x7c0] ss:$16 sps:$4 sm:$0xff]  }
 0x24c   : > { %v4504_v2 = vpop.eup %4503 }
 0x24e   : > { %2792 = vmatpush1.bf16.msra.mxu0 %v4373_v26  ;;  %2956 = vmatpush1.bf16.msra.mxu1 %v4376_v27  ;;  %v4453_v26 = vld [vmem:[#allocation9 + $0x7e4] ss:$16 sps:$4 sm:$0xff]   ;;  %v4456_v27 = vld [vmem:[#allocation9 + $0x7ec] ss:$16 sps:$4 sm:$0xff]  }
 0x24f   : > { %2793 = vmatprep.subr.bf16.mxu0 %v4381_v13  ;;  %2957 = vmatprep.subr.bf16.mxu1 %v4384_v28  ;;  %v1088_v13 = vadd.bf16 1065369472, %v4504_v2  ;;  %v4451_v28 = vld [vmem:[#allocation9 + $0x7e0] ss:$16 sps:$4 sm:$0xff]  }
 0x252   : > { %2794 = vmatpush1.bf16.msra.mxu0 %v4379_v30  ;;  %2958 = vmatpush1.bf16.msra.mxu1 %v4382_v32  ;;  %v1096_v30 = vmul.bf16 1056980736, %v1088_v13 }
 0x253   : > { %2795 = vmatprep.subr.bf16.mxu0 %v4387_v33  ;;  %2959 = vmatprep.subr.bf16.mxu1 %v4390_v24  ;;  %v4457_v33 = vld [vmem:[#allocation11 + $0x40] sm:$0xff]  }
 0x254   : > { %v1104_v32 = vmul.bf16 %v1096_v30, %v5133_v40  ;;  %v4458_v24 = vld [vmem:[#allocation11 + $0xc0] sm:$0xff]   ;;  %v4466_v40 = vld [vmem:[#allocation11 + $0xd0] sm:$0xff]  }
 0x256   : > { %2796 = vmatpush1.bf16.msra.mxu0 %v4385_v36  ;;  %2960 = vmatpush1.bf16.msra.mxu1 %v4388_v37  ;;  %v4460_v36 = vld [vmem:[#allocation11 + $0x80] sm:$0xff]   ;;  %v4461_v37 = vld [vmem:[#allocation11 + $0x48] sm:$0xff]  }
 0x257   : > { %2797 = vmatprep.subr.bf16.mxu0 %v4393_v38  ;;  %2961 = vmatprep.subr.bf16.mxu1 %v4396_v39  ;;  %v4462_v38 = vld [vmem:[#allocation11 + $0xc8] sm:$0xff]  }
 0x258   : > { %v4463_v39 = vld [vmem:[#allocation11 + $0x8] sm:$0xff]  }
 0x25a   : > { %2798 = vmatpush1.bf16.msra.mxu0 %v4391_v9  ;;  %2962 = vmatpush1.bf16.msra.mxu1 %v4394_v41  ;;  %v4464_v9 = vld [vmem:[#allocation11 + $0x88] sm:$0xff]   ;;  %v4465_v41 = vld [vmem:[#allocation11 + $0x50] sm:$0xff]  }
 0x25b   : > { %2799 = vmatprep.subr.bf16.mxu0 %v4399_v42  ;;  %2963 = vmatprep.subr.bf16.mxu1 %v4402_v43  ;;  %v4467_v42 = vld [vmem:[#allocation11 + $0x10] sm:$0xff]  }
 0x25c   : > { %v4468_v43 = vld [vmem:[#allocation11 + $0x90] sm:$0xff]  }
 0x25e   : > { %2800 = vmatpush1.bf16.msra.mxu0 %v4397_v0  ;;  %2964 = vmatpush1.bf16.msra.mxu1 %v4400_v44  ;;  %v4470_v0 = vld [vmem:[#allocation11 + $0xd8] sm:$0xff]  }
 0x25f   : > { %2801 = vmatprep.subr.bf16.mxu0 %v4405_v45  ;;  %2965 = vmatprep.subr.bf16.mxu1 %v4408_v46  ;;  %v4471_v44 = vld [vmem:[#allocation11 + $0x18] sm:$0xff]   ;;  %v4473_v46 = vld [vmem:[#allocation11 + $0x60] sm:$0xff]  }
 0x260   : > { %v4472_v45 = vld [vmem:[#allocation11 + $0x98] sm:$0xff]  }
 0x262   : > { %2802 = vmatpush1.bf16.msra.mxu0 %v4403_v31  ;;  %2966 = vmatpush1.bf16.msra.mxu1 %v4406_v48  ;;  %v4475_v31 = vld [vmem:[#allocation11 + $0x20] sm:$0xff]  }
 0x263   : > { %2803 = vmatprep.subr.bf16.mxu0 %v4411_v49  ;;  %2967 = vmatprep.subr.bf16.mxu1 %v4414_v34  ;;  %v4476_v48 = vld [vmem:[#allocation11 + $0xa0] sm:$0xff]   ;;  %v4477_v49 = vld [vmem:[#allocation11 + $0x68] sm:$0xff]  }
 0x264   : > { %v4478_v34 = vld [vmem:[#allocation11 + $0xe8] sm:$0xff]  }
 0x266   : > { %2804 = vmatpush1.bf16.msra.mxu0 %v4409_v52  ;;  %2968 = vmatpush1.bf16.msra.mxu1 %v4412_v53  ;;  %v4480_v52 = vld [vmem:[#allocation11 + $0xa8] sm:$0xff]   ;;  %v4481_v53 = vld [vmem:[#allocation11 + $0x70] sm:$0xff]  }
 0x267   : > { %2805 = vmatprep.subr.bf16.mxu0 %v4417_v54  ;;  %2969 = vmatprep.subr.bf16.mxu1 %v4420_v55  ;;  %v4482_v54 = vld [vmem:[#allocation11 + $0xf0] sm:$0xff]  }
 0x268   : > { %v4483_v55 = vld [vmem:[#allocation11 + $0x30] sm:$0xff]  }
 0x26a   : > { %2806 = vmatpush1.bf16.msra.mxu0 %v4415_v57  ;;  %2970 = vmatpush1.bf16.msra.mxu1 %v4418_v58  ;;  %v4485_v57 = vld [vmem:[#allocation11 + $0x78] sm:$0xff]  }
 0x26b   : > { %2807 = vmatprep.subr.bf16.mxu0 %v4423_v59  ;;  %2971 = vmatprep.subr.bf16.mxu1 %v4426_v60  ;;  %v4486_v58 = vld [vmem:[#allocation11 + $0xf8] sm:$0xff]  }
 0x26c   : > { %v4487_v59 = vld [vmem:[#allocation11 + $0x38] sm:$0xff]  }
 0x26d   : > { %v4488_v60 = vld [vmem:[#allocation11 + $0xb8] sm:$0xff]  }
 0x26e   : > { %2808 = vmatpush1.bf16.msra.mxu0 %v4421_v62  ;;  %2972 = vmatpush1.bf16.msra.mxu1 %v4424_v63  ;;  %v1367_v62 = vrot.slane %v1362_v61, %v980_v8  ;;  %v1375_v63 = vrot.slane %v1362_v61, %v988_v5 }
 0x26f   : > { %2809 = vmatprep.subr.bf16.mxu0 %v4429_v1  ;;  %2973 = vmatprep.subr.bf16.mxu1 %v4432_v11  ;;  %v1371_v1 = vrot.slane %v1362_v61, %v984_v10  ;;  %v1379_v11 = vrot.slane %v1362_v61, %v992_v14 }
 0x272   : > { %2810 = vmatpush1.bf16.msra.mxu0 %v4427_v12  ;;  %2974 = vmatpush1.bf16.msra.mxu1 %v4430_v51 }
 0x273   : > { %2811 = vmatprep.subr.bf16.mxu0 %v4435_v15  ;;  %2975 = vmatprep.subr.bf16.mxu1 %v4438_v16 }
 0x276   : > { %2812 = vmatpush1.bf16.msra.mxu0 %v4433_v6  ;;  %2976 = vmatpush1.bf16.msra.mxu1 %v4436_v17 }
 0x277   : > { %2813 = vmatprep.subr.bf16.mxu0 %v4441_v18  ;;  %2977 = vmatprep.subr.bf16.mxu1 %v4444_v19 }
 0x27a   : > { %2814 = vmatpush1.bf16.msra.mxu0 %v4439_v20  ;;  %2978 = vmatpush1.bf16.msra.mxu1 %v4442_v21 }
 0x27b   : > { %2815 = vmatprep.subr.bf16.mxu0 %v4447_v22  ;;  %2979 = vmatprep.subr.bf16.mxu1 %v4450_v23 }
 0x27e   : > { %2816 = vmatpush1.bf16.msra.mxu0 %v4445_v25  ;;  %2980 = vmatpush1.bf16.msra.mxu1 %v4448_v3 }
 0x27f   : > { %2817 = vmatprep.subr.bf16.mxu0 %v4453_v26  ;;  %2981 = vmatprep.subr.bf16.mxu1 %v4456_v27 }
 0x282   : > { %2818 = vmatpush1.bf16.msra.mxu0 %v4451_v28  ;;  %2982 = vmatpush1.bf16.msra.mxu1 %v4454_v29 }
 0x283   : > { %3891 = vmatprep.subr.bf16.mxu0 %v4457_v33  ;;  %3913 = vmatprep.subr.bf16.mxu1 %v4458_v24 }
 0x285   : > { %2820 = vmatmul.mubr.bf16.vlgmr.msra.gmra.mrb[8].mxu0 %v1104_v32  ;;  %2984 = vmatmul.mubr.bf16.vlgmr.msra.gmra.mrb[8].mxu1 %v1104_v32 }
 0x286   : > { %3892 = vmatpush3.bf16.msra.mxu0 %v4459_v35  ;;  %3914 = vmatpush3.bf16.msra.mxu1 %v4460_v36 }
 0x287   : > { %3893 = vmatprep.subr.bf16.mxu0 %v4461_v37  ;;  %3915 = vmatprep.subr.bf16.mxu1 %v4462_v38 }
 0x28a   : > { %3894 = vmatpush3.bf16.msra.mxu0 %v4463_v39  ;;  %3916 = vmatpush3.bf16.msra.mxu1 %v4464_v9 }
 0x28b   : > { %3895 = vmatprep.subr.bf16.mxu0 %v4465_v41  ;;  %3917 = vmatprep.subr.bf16.mxu1 %v4466_v40 }
 0x28e   : > { %3896 = vmatpush3.bf16.msra.mxu0 %v4467_v42  ;;  %3918 = vmatpush3.bf16.msra.mxu1 %v4468_v43 }
 0x28f   : > { %3897 = vmatprep.subr.bf16.mxu0 %v4469_v4  ;;  %3919 = vmatprep.subr.bf16.mxu1 %v4470_v0 }
 0x292   : > { %3898 = vmatpush3.bf16.msra.mxu0 %v4471_v44  ;;  %3920 = vmatpush3.bf16.msra.mxu1 %v4472_v45 }
 0x293   : > { %3899 = vmatprep.subr.bf16.mxu0 %v4473_v46  ;;  %3921 = vmatprep.subr.bf16.mxu1 %v4474_v47 }
 0x296   : > { %3900 = vmatpush3.bf16.msra.mxu0 %v4475_v31  ;;  %3922 = vmatpush3.bf16.msra.mxu1 %v4476_v48 }
 0x297   : > { %3901 = vmatprep.subr.bf16.mxu0 %v4477_v49  ;;  %3923 = vmatprep.subr.bf16.mxu1 %v4478_v34 }
 0x29a   : > { %3902 = vmatpush3.bf16.msra.mxu0 %v4479_v50  ;;  %3924 = vmatpush3.bf16.msra.mxu1 %v4480_v52 }
 0x29b   : > { %3903 = vmatprep.subr.bf16.mxu0 %v4481_v53  ;;  %3925 = vmatprep.subr.bf16.mxu1 %v4482_v54 }
 0x29e   : > { %3904 = vmatpush3.bf16.msra.mxu0 %v4483_v55  ;;  %3926 = vmatpush3.bf16.msra.mxu1 %v4484_v56  ;;  %v3853_v56 = vld [vmem:[%s5215_s6] ss:$0 sm:$0xff] }
 0x29f   : > { %3905 = vmatprep.subr.bf16.mxu0 %v4485_v57  ;;  %3927 = vmatprep.subr.bf16.mxu1 %v4486_v58 }
 0x2a2   : > { %3906 = vmatpush3.bf16.msra.mxu0 %v4487_v59  ;;  %3928 = vmatpush3.bf16.msra.mxu1 %v4488_v60 }
 0x358   : > { %v2821_v12 = vpop.f32.mrb[8].mxu0  ;;  %v2985_v51 = vpop.f32.mrb[8].mxu1 }
 0x359   : > { %v3935_v15 = vadd.f32 %v2821_v12, %v1367_v62  ;;  %v3937_v16 = vadd.f32 %v2985_v51, %v1375_v63  ;;  %v2823_v6 = vpop.f32.mrb[9].mxu0  ;;  %v2987_v17 = vpop.f32.mrb[9].mxu1 }
 0x35a   : > { %v3936_v18 = vadd.f32 %v2823_v6, %v1371_v1  ;;  %v3938_v19 = vadd.f32 %v2987_v17, %v1379_v11  ;;  %v2825_v20 = vpop.f32.mrb[10].mxu0  ;;  %v2989_v21 = vpop.f32.mrb[10].mxu1 }
 0x35b   : > { %v2992_v8 = vpack.c.bf16 %v3935_v15, %v3935_v15  ;;  %v2994_v22 = vpack.c.bf16 %v3937_v16, %v3937_v16  ;;  %v2826_v23 = vpop.f32.mrb[11].mxu0  ;;  %v2990_v5 = vpop.f32.mrb[11].mxu1 }
 0x35c   : > { %v2993_v2 = vpack.c.bf16 %v3936_v18, %v3936_v18  ;;  %v2995_v25 = vpack.c.bf16 %v3938_v19, %v3938_v19 }
 0x35d   : > { %v2996_v10 = vmul.bf16 %v2992_v8, %v2992_v8  ;;  %v2998_v3 = vmul.bf16 %v2994_v22, %v2994_v22 }
 0x35e   : > { %v2997_v7 = vmul.bf16 %v2993_v2, %v2993_v2  ;;  %v2999_v14 = vmul.bf16 %v2995_v25, %v2995_v25 }
 0x35f   : > { %v3000_v26 = vmul.bf16 %v2996_v10, %v2992_v8  ;;  %v3002_v27 = vmul.bf16 %v2998_v3, %v2994_v22 }
 0x360   : > { %v3001_v13 = vmul.bf16 %v2997_v7, %v2993_v2  ;;  %v3003_v28 = vmul.bf16 %v2999_v14, %v2995_v25 }
 0x361   : > { %v3004_v29 = vmul.bf16 1027030327, %v3000_v26  ;;  %v3006_v30 = vmul.bf16 1027030327, %v3002_v27 }
 0x362   : > { %v3005_v32 = vmul.bf16 1027030327, %v3001_v13  ;;  %v3007_v33 = vmul.bf16 1027030327, %v3003_v28 }
 0x363   : > { %v3008_v24 = vadd.bf16 %v3004_v29, %v2992_v8  ;;  %v3010_v35 = vadd.bf16 %v3006_v30, %v2994_v22 }
 0x364   : > { %v3009_v36 = vadd.bf16 %v3005_v32, %v2993_v2  ;;  %v3011_v37 = vadd.bf16 %v3007_v33, %v2995_v25 }
 0x365   : > { %v3012_v38 = vmul.bf16 1061961548, %v3008_v24  ;;  %v3014_v39 = vmul.bf16 1061961548, %v3010_v35 }
 0x366   : > { %v3013_v9 = vmul.bf16 1061961548, %v3009_v36  ;;  %v3015_v41 = vmul.bf16 1061961548, %v3011_v37 }
 0x367   : > { %4505 = vtanh.bf16 %v3012_v38 }
 0x368   : > { %4507 = vtanh.bf16 %v3014_v39 }
 0x369   : > { %4509 = vtanh.bf16 %v3013_v9 }
 0x36a   : > { %4511 = vtanh.bf16 %v3015_v41 }
 0x372   : > { %v4506_v40 = vpop.eup %4505 }
 0x373   : > { %v4508_v42 = vpop.eup %4507  ;;  %v3020_v43 = vadd.bf16 1065369472, %v4506_v40 }
 0x374   : > { %v4510_v4 = vpop.eup %4509  ;;  %v3022_v0 = vadd.bf16 1065369472, %v4508_v42 }
 0x375   : > { %v4512_v44 = vpop.eup %4511  ;;  %v3021_v45 = vadd.bf16 1065369472, %v4510_v4  ;;  %v3024_v47 = vmul.bf16 1056980736, %v3020_v43 }
 0x376   : > { %v3023_v46 = vadd.bf16 1065369472, %v4512_v44  ;;  %v3026_v48 = vmul.bf16 1056980736, %v3022_v0 }
 0x377   : > { %v3025_v31 = vmul.bf16 1056980736, %v3021_v45  ;;  %v3028_v52 = vmul.bf16 %v3024_v47, %v2992_v8 }
 0x378   : > { %v3027_v49 = vmul.bf16 1056980736, %v3023_v46  ;;  %v3030_v53 = vmul.bf16 %v3026_v48, %v2994_v22 }
 0x379   : > { %v3029_v34 = vmul.bf16 %v3025_v31, %v2993_v2 }
 0x37a   : > { %v3031_v50 = vmul.bf16 %v3027_v49, %v2995_v25 }
 0x37b   : > { %3327 = vmatprep.mubr.bf16.mxu0 %v3029_v34 }
 0x37c   : > { %3367 = vmatprep.mubr.bf16.mxu1 %v3031_v50  ;;  %3328 = vmatmul.mubr.bf16.vlgmr.msra.gmra.mrb[12].mxu0 %v3028_v52 }
 0x37d   : > { %3368 = vmatmul.mubr.bf16.vlgmr.msra.gmra.mrb[12].mxu1 %v3030_v53 }
 0x44f   : > { %v3907_v54 = vpop.f32.mrb[12].mxu0 }
 0x450   : > { %v3929_v55 = vpop.f32.mrb[12].mxu1  ;;  %v3908_v57 = vpop.f32.mrb[13].mxu0 }
 0x451   : > { %v3909_v58 = vadd.f32 %v3908_v57, %v3907_v54  ;;  %v3930_v59 = vpop.f32.mrb[13].mxu1  ;;  %v3910_v60 = vpop.f32.mrb[14].mxu0 }
 0x452   : > { %v3931_v61 = vadd.f32 %v3930_v59, %v3929_v55  ;;  %v3932_v62 = vpop.f32.mrb[14].mxu1  ;;  %v3911_v63 = vpop.f32.mrb[15].mxu0 }
 0x453   : > { %v3330_v1 = vadd.f32 %v3909_v58, %v3853_v56  ;;  %v3933_v11 = vpop.f32.mrb[15].mxu1 }
 0x455   : > { %v3370_v12 = vadd.f32 %v3931_v61, %v3330_v1 }
 0x457   : > { %v3886_v51 = vmul.f32 -1.442695, %v3370_v12 }
 0x459   : > { %4513 = vpow2.f32 %v3886_v51 }
 0x463   : > { %v4514_v15 = vpop.eup %4513 }
 0x464   : > { %v3378_v16 = vadd.f32 1.0, %v4514_v15 }
 0x466   : > { %4515 = vrcp.f32 %v3378_v16 }
 0x470   : > { %v4516_v6 = vpop.eup %4515 }
 0x471   : > { %v3381_v17 = vpack.c.bf16 %v4516_v6, %v4516_v6 }
 0x473   : > { %3382 = vst [vmem:[%s373_s12] sm:$0xf] %v3381_v17 }
 0x474   : > { %4672 = shalt.err (!%p4669_p8)
}
 0x475   : > { %s4673_s2 = scalar_lea.hbm %s5160_s17, 64  ;;  %s4677_s18 = scalar_lea.hbm %s5216_s7, 128 }
 0x476   : > { %p4674_p12 = scmp.ne.s32.totalorder %s5160_s17, %s4673_s2  ;;  %p4678_p3 = scmp.lt.u32.totalorder %s5160_s17, %s5216_s7 }
 0x477   : > { %p4679_p1 = scmp.lt.u32.totalorder %s4677_s18, %s4673_s2  ;;  %p4681_p2 = scmp.lt.u32.totalorder %s4673_s2, %s5160_s17 }
 0x478   : > { %p4675_p13 = pnand %p4674_p12, %p5239_p9 }
 0x479   : > { %p4680_p4 = por %p4679_p1, %p4678_p3 }
 0x47a   : > { %p4676_p6 = pneg %p4675_p13 }
 0x47b   : > { %p4682_p10 = por %p4681_p2, %p4680_p4 }
 0x47d   : > { %p4683_p11 = pnand %p4682_p10, %p4676_p6 }
 0x47f   : > { %4686 = shalt.err (!%p4683_p11)
}
 0x480   : > { %3981 = dma.vmem_to_hbm [thread:$0]  (%p5239_p9), %s5162_s19, 64, %s5160_s17, %s3384_s13  }
 0x481 PF: > { %s3409_s12 = sand.u32 1, %s4729_s24   ;;  %p5240_p0 = scmp.ne.s32.totalorder %s5235_s23, 0 }
 0x482   : > { %p5241_p7 = scmp.ge.s32.totalorder %s4749_s29, 2  ;;  %s3410_s11 = scalar_lea.sflag [#allocation5], %s3409_s12 }
 0x484   : > { %p4001_p5 = pnand %p5241_p7, %p5240_p0 }
 0x486   : > { %4724 = dma.done.wait (!%p4001_p5), %s3410_s11, 64  }
 0x487   : > { %4726 = vsyncadd (!%p4001_p5), %s3410_s11, 4294967232  ;;  %s25_s29 = sadd.s32 1, %s4749_s29   ;;  %s5242_s24 = smov %s4733_s25 }
 0x488   : > { %p22_p8 = scmp.ge.s32.totalorder %s25_s29, 4   ;;  %s5243_s25 = smov %s4737_s26 }
 0x489   : > { %s5244_s26 = smov %s4984_s22  ;;  %s5245_s27 = smov %s4745_s28 }
 0x48a   : > { %s5246_s28 = smov %s5248_s30  ;;  %24 = sbr.rel (!%p22_p8) target bundleno = 11 (0xb), region = 118 }
 0x491   :  { %3415 = vsyncpa [#allocation4], 1 }
 0x492   :  { %3417 = vsyncpa [#allocation4 + $0x1], 1 }
 0x493   :  { %3418 = vsyncpa [#allocation7], 1 }
 0x494   :  { %3419 = vsyncpa [#allocation10], 1 }
 0x495   :  { %3420 = vsyncpa [#allocation5], 1 }
 0x496   :  { %3422 = vsyncpa [#allocation5 + $0x1], 1 }

</bundles_post_ra>
